<compile_context>
chip_gen: v7x
topology: tpu7x:2x2x1
jax: 0.10.0
libtpu: 0.0.40
codegen_flags: <defaults>
</compile_context>

<pallas_src>
import jax
import jax.numpy as jnp
from jax.experimental import pallas as pl
from jax.experimental.pallas import tpu as pltpu


# ------------------------------ Fused kernel ---------------------------------

def cnn_fused_kernel(x_ref,                       # (B, L, 1) f32
                     w1_ref, s1_ref, b1_ref,      # (K1, 1, C1) f32, (1, C1) x2
                     w2_ref, s2_ref, b2_ref,      # (K2*C1, C2) bf16, (1, C2) x2
                     w3_ref, s3_ref, b3_ref,      # (K3*C2, C3) bf16, (1, C3) x2
                     fc1w_ref, fc1b_ref,          # (L*C3, 256) bf16, (1, 256) f32
                     fc2w_ref, fc2b_ref,          # (256, 64) bf16, (1, 64) f32
                     fc3w_ref, fc3b_ref,          # (1, 64) f32, (1, 1) f32
                     o_ref,                       # (B, 1) f32
                     xpad_ref,                    # (B, L+K1-1, C1) f32 scratch
                     h1pad_ref,                   # (B, L+K2-1, C1) f32 scratch
                     h2pad_ref):                  # (B, L+K3-1, C2) f32 scratch
    B, L, _ = x_ref.shape
    K1, _, C1 = w1_ref.shape
    C2 = w2_ref.shape[1]
    C3 = w3_ref.shape[1]
    K2 = h1pad_ref.shape[1] - L + 1
    K3 = h2pad_ref.shape[1] - L + 1
    P1, P2, P3 = (K1 - 1) // 2, (K2 - 1) // 2, (K3 - 1) // 2

    # ---- layer 1: Conv1d(1->C1, K1, pad P1) + BN + ReLU  (VPU path, Cin==1) --
    # Halo-only zeroing; interior is fully overwritten by the broadcast input.
    xpad_ref[:, :P1, :] = jnp.zeros((B, P1, C1), jnp.float32)
    xpad_ref[:, P1 + L:, :] = jnp.zeros((B, K1 - 1 - P1, C1), jnp.float32)
    xpad_ref[:, P1:P1 + L, :] = jnp.broadcast_to(x_ref[...], (B, L, C1))
    acc1 = jnp.zeros((B, L, C1), jnp.float32)
    for k in range(K1):                                  # K1 tiny & static
        acc1 = acc1 + xpad_ref[:, k:k + L, :] * w1_ref[k]        # (B,L,C1)*(1,C1)
    # Fold BN + ReLU and store straight into layer-2's padded scratch interior.
    h1pad_ref[:, :P2, :] = jnp.zeros((B, P2, C1), jnp.float32)
    h1pad_ref[:, P2 + L:, :] = jnp.zeros((B, K2 - 1 - P2, C1), jnp.float32)
    h1pad_ref[:, P2:P2 + L, :] = jnp.maximum(
        acc1 * s1_ref[...] + b1_ref[...], 0.0)                   # (B, L, C1)

    # ---- layer 2: Conv1d(C1->C2, K2, pad P2) + BN + ReLU  (one im2col dot) ---
    cols2 = jnp.concatenate(
        [h1pad_ref[:, k:k + L, :].reshape(B * L, C1) for k in range(K2)],
        axis=-1).astype(jnp.bfloat16)                            # (B*L, K2*C1)
    acc2 = jnp.dot(cols2, w2_ref[...], preferred_element_type=jnp.float32)
    h2pad_ref[:, :P3, :] = jnp.zeros((B, P3, C2), jnp.float32)
    h2pad_ref[:, P3 + L:, :] = jnp.zeros((B, K3 - 1 - P3, C2), jnp.float32)
    h2pad_ref[:, P3:P3 + L, :] = jnp.maximum(
        acc2 * s2_ref[...] + b2_ref[...], 0.0).reshape(B, L, C2)

    # ---- layer 3: Conv1d(C2->C3, K3, pad P3) + BN + ReLU  (one im2col dot) ---
    cols3 = jnp.concatenate(
        [h2pad_ref[:, k:k + L, :].reshape(B * L, C2) for k in range(K3)],
        axis=-1).astype(jnp.bfloat16)                            # (B*L, K3*C2)
    acc3 = jnp.dot(cols3, w3_ref[...], preferred_element_type=jnp.float32)
    h3 = jnp.maximum(acc3 * s3_ref[...] + b3_ref[...], 0.0)      # (B*L, C3)

    # ---- flatten (channels-last, lane-dense) + MLP head ----
    # Rows of fc1_w were permuted at parameter-prep time so this single reshape
    # matches PyTorch's view(B, -1) on the (B, C, L) tensor exactly.
    feat = h3.reshape(B, L * C3)                                 # (B, L*C3)
    h = jnp.dot(feat.astype(jnp.bfloat16), fc1w_ref[...],
                preferred_element_type=jnp.float32)
    h = jnp.maximum(h + fc1b_ref[...], 0.0)                      # (B, 256)
    # TODO(synk): Dropout(0.15) layers are eval-mode identity and omitted.
    h = jnp.dot(h.astype(jnp.bfloat16), fc2w_ref[...],
                preferred_element_type=jnp.float32)
    h = jnp.maximum(h + fc2b_ref[...], 0.0)                      # (B, 64)
    # Final 64 -> 1 layer as a broadcast multiply + lane reduction (avoids a
    # degenerate (B,64)@(64,1) matmul).
    logits = jnp.sum(h * fc3w_ref[...], axis=-1, keepdims=True) + fc3b_ref[...]
    o_ref[...] = jax.nn.sigmoid(logits)                          # (B, 1)


# -------------------------------- Wrapper -------------------------------------

_VMEM = pl.BlockSpec(memory_space=pltpu.MemorySpace.VMEM)


def cnn_fused(x, p):
    """x: (B, L, 1) f32 -> (B, 1) f32, everything in one pallas_call."""
    B, L, _ = x.shape
    K1, _, C1 = p["w1"].shape
    C2 = p["w2"].shape[1]
    K2 = p["w2"].shape[0] // C1
    C3 = p["w3"].shape[1]
    K3 = p["w3"].shape[0] // C2
    args = (x,
            p["w1"], p["s1"], p["b1"],
            p["w2"], p["s2"], p["b2"],
            p["w3"], p["s3"], p["b3"],
            p["fc1_w"], p["fc1_b"], p["fc2_w"], p["fc2_b"],
            p["fc3_w"], p["fc3_b"])
    return pl.pallas_call(
        cnn_fused_kernel,
        out_shape=jax.ShapeDtypeStruct((B, 1), jnp.float32),
        in_specs=[_VMEM] * len(args),
        out_specs=_VMEM,
        scratch_shapes=[
            pltpu.VMEM((B, L + K1 - 1, C1), jnp.float32),   # broadcast-padded input
            pltpu.VMEM((B, L + K2 - 1, C1), jnp.float32),   # padded h1
            pltpu.VMEM((B, L + K3 - 1, C2), jnp.float32),   # padded h2
        ],
        compiler_params=pltpu.CompilerParams(
            vmem_limit_bytes=32 * 1024 * 1024),             # > v5e's 16 MiB default
    )(*args)


def cnn_forward(x, params):
    """x: (B, L) float32  ->  (B,) float32 (sigmoid output)."""
    B, L = x.shape
    out = cnn_fused(x.reshape(B, L, 1), params)   # unsqueeze(1) in NCL == trailing channel
    return out[:, 0]                              # squeeze(1)


# ------------------------------ Parameters ------------------------------------

def init_torch_params(input_length, key):
    """Random parameters in PyTorch's native layouts (Conv1d: (Cout,Cin,K); Linear: (out,in))."""
    ks = jax.random.split(key, 12)

    def conv(kw, kb, cout, cin, k):
        return {"w": 0.1 * jax.random.normal(kw, (cout, cin, k), jnp.float32),
                "b": 0.1 * jax.random.normal(kb, (cout,), jnp.float32),
                "gamma": jnp.ones((cout,), jnp.float32),
                "beta": jnp.zeros((cout,), jnp.float32),
                "mean": jnp.zeros((cout,), jnp.float32),
                "var": jnp.ones((cout,), jnp.float32)}

    def lin(kw, kb, dout, din):
        return {"w": 0.05 * jax.random.normal(kw, (dout, din), jnp.float32),
                "b": 0.05 * jax.random.normal(kb, (dout,), jnp.float32)}

    return {"conv1": conv(ks[0], ks[1], 32, 1, 5),
            "conv2": conv(ks[2], ks[3], 64, 32, 5),
            "conv3": conv(ks[4], ks[5], 128, 64, 3),
            "fc1": lin(ks[6], ks[7], 256, 128 * input_length),
            "fc2": lin(ks[8], ks[9], 64, 256),
            "fc3": lin(ks[10], ks[11], 1, 64)}


def prepare_params(tp, input_length, eps=1e-5):
    """Convert PyTorch-layout params to the kernel layout (one-time, host side)."""
    L = input_length

    def fold(c):
        scale = c["gamma"] / jnp.sqrt(c["var"] + eps)             # (Cout,)
        bias = c["beta"] + (c["b"] - c["mean"]) * scale           # (Cout,)
        return scale.reshape(1, -1), bias.reshape(1, -1)

    def im2col_w(w):
        # (Cout, Cin, K) -> (K*Cin, Cout): column order of the in-kernel im2col
        # concat is tap-major, cin-minor.
        cout, cin, k = w.shape
        return jnp.transpose(w, (2, 1, 0)).reshape(k * cin, cout)

    p = {}
    # Layer 1 stays f32 (VPU path, Cin==1): (Cout,1,K) -> (K,1,Cout).
    p["w1"] = jnp.transpose(tp["conv1"]["w"], (2, 1, 0)).astype(jnp.float32)
    p["s1"], p["b1"] = fold(tp["conv1"])
    # Layers 2/3 as im2col weights in bf16 (MXU operands).
    p["w2"] = im2col_w(tp["conv2"]["w"]).astype(jnp.bfloat16)     # (K2*C1, C2)
    p["s2"], p["b2"] = fold(tp["conv2"])
    p["w3"] = im2col_w(tp["conv3"]["w"]).astype(jnp.bfloat16)     # (K3*C2, C3)
    p["s3"], p["b3"] = fold(tp["conv3"])

    # fc1: torch weight (256, 128*L) with input index c*L + l (NCL flatten).
    # The kernel flattens channels-last (index l*128 + c), so permute the rows
    # once here instead of transposing the activation at runtime.
    w1t = tp["fc1"]["w"].T                                        # (128*L, 256), row = c*L + l
    w1t = w1t.reshape(128, L, 256).transpose(1, 0, 2).reshape(L * 128, 256)
    p["fc1_w"] = w1t.astype(jnp.bfloat16)                         # row = l*128 + c
    p["fc1_b"] = tp["fc1"]["b"].reshape(1, -1)
    p["fc2_w"] = tp["fc2"]["w"].T.astype(jnp.bfloat16)            # (256, 64) bf16
    p["fc2_b"] = tp["fc2"]["b"].reshape(1, -1)
    p["fc3_w"] = tp["fc3"]["w"]                                   # (1, 64) broadcast form
    p["fc3_b"] = tp["fc3"]["b"].reshape(1, 1)
    return p


# --------------------------- Pure-JAX reference --------------------------------

def reference_forward(x, tp, eps=1e-5):
    """PyTorch eval-mode semantics in plain JAX (f32), for the unit test."""
    def conv_bn_relu(h, c):                                       # h: (B, Cin, L)
        w, b = c["w"], c["b"]                                     # (Cout, Cin, K)
        pad = (w.shape[-1] - 1) // 2
        y = jax.lax.conv_general_dilated(
            h, w, window_strides=(1,), padding=[(pad, pad)],
            dimension_numbers=("NCH", "OIH", "NCH"))
        y = y + b[None, :, None]
        y = (y - c["mean"][None, :, None]) / jnp.sqrt(c["var"][None, :, None] + eps)
        y = y * c["gamma"][None, :, None] + c["beta"][None, :, None]
        return jnp.maximum(y, 0.0)

    h = x[:, None, :]
    h = conv_bn_relu(h, tp["conv1"])
    h = conv_bn_relu(h, tp["conv2"])
    h = conv_bn_relu(h, tp["conv3"])
    f = h.reshape(h.shape[0], -1)
    f = jnp.maximum(f @ tp["fc1"]["w"].T + tp["fc1"]["b"], 0.0)
    f = jnp.maximum(f @ tp["fc2"]["w"].T + tp["fc2"]["b"], 0.0)
    f = f @ tp["fc3"]["w"].T + tp["fc3"]["b"]
    return jax.nn.sigmoid(f)[:, 0]


# ----------------------------------- Main ---------------------------------------

if __name__ == "__main__":
    INPUT_LENGTH = 16
    BATCH = 2

    x = jax.random.normal(jax.random.PRNGKey(0), (BATCH, INPUT_LENGTH), jnp.float32)

    torch_params = init_torch_params(INPUT_LENGTH, jax.random.PRNGKey(42))
    params = prepare_params(torch_params, INPUT_LENGTH)

    out = jax.jit(cnn_forward)(x, params)
    out = jax.block_until_ready(out)

    assert out.shape == (BATCH,)
    assert bool(jnp.all(jnp.isfinite(out)))
    assert bool(jnp.all((out >= 0.0) & (out <= 1.0)))

    # Unit test vs. f32 reference (guards the fc1 row permutation, the im2col
    # weight reshape and the BN folding; tolerance covers bf16 matmul operands).
    ref = reference_forward(x, torch_params)
    err = float(jnp.max(jnp.abs(out - ref)))
    assert err < 5e-2, f"mismatch vs pure-JAX reference: max abs err = {err}"

    print("KERNEL_OK")
</pallas_src>

<mosaic_0001>
module attributes {stable_mosaic.version = 11 : i64} {
  func.func @cnn_fused_kernel(%arg0: memref<2x16x1xf32, #tpu.memory_space<vmem>>, %arg1: memref<5x1x32xf32, #tpu.memory_space<vmem>>, %arg2: memref<1x32xf32, #tpu.memory_space<vmem>>, %arg3: memref<1x32xf32, #tpu.memory_space<vmem>>, %arg4: memref<160x64xbf16, #tpu.memory_space<vmem>>, %arg5: memref<1x64xf32, #tpu.memory_space<vmem>>, %arg6: memref<1x64xf32, #tpu.memory_space<vmem>>, %arg7: memref<192x128xbf16, #tpu.memory_space<vmem>>, %arg8: memref<1x128xf32, #tpu.memory_space<vmem>>, %arg9: memref<1x128xf32, #tpu.memory_space<vmem>>, %arg10: memref<2048x256xbf16, #tpu.memory_space<vmem>>, %arg11: memref<1x256xf32, #tpu.memory_space<vmem>>, %arg12: memref<256x64xbf16, #tpu.memory_space<vmem>>, %arg13: memref<1x64xf32, #tpu.memory_space<vmem>>, %arg14: memref<1x64xf32, #tpu.memory_space<vmem>>, %arg15: memref<1x1xf32, #tpu.memory_space<vmem>>, %arg16: memref<2x1xf32, #tpu.memory_space<vmem>>, %arg17: memref<2x20x32xf32, #tpu.memory_space<vmem>>, %arg18: memref<2x20x32xf32, #tpu.memory_space<vmem>>, %arg19: memref<2x18x64xf32, #tpu.memory_space<vmem>>) attributes {dimension_semantics = [], scalar_prefetch = 0 : i64, scratch_operands = 3 : i64, tpu.core_type = #tpu.core_type<tc>} {
    %cst = arith.constant 0.000000e+00 : f32
    %0 = vector.broadcast %cst : f32 to vector<2x2x32xf32>
    %c0 = arith.constant 0 : index
    %c0_0 = arith.constant 0 : index
    %c0_1 = arith.constant 0 : index
    %1 = vector.load %arg17[%c0, %c0_0, %c0_1] : memref<2x20x32xf32, #tpu.memory_space<vmem>>, vector<2x2x32xf32>
    tpu.vector_store %arg17[%c0, %c0_0, %c0_1], %0 {strides = array<i32>} : memref<2x20x32xf32, #tpu.memory_space<vmem>>, vector<2x2x32xf32>,
    %cst_2 = arith.constant 0.000000e+00 : f32
    %2 = vector.broadcast %cst_2 : f32 to vector<2x2x32xf32>
    %c0_3 = arith.constant 0 : index
    %c18 = arith.constant 18 : index
    %c0_4 = arith.constant 0 : index
    %3 = vector.load %arg17[%c0_3, %c18, %c0_4] : memref<2x20x32xf32, #tpu.memory_space<vmem>>, vector<2x2x32xf32>
    tpu.vector_store %arg17[%c0_3, %c18, %c0_4], %2 {strides = array<i32>} : memref<2x20x32xf32, #tpu.memory_space<vmem>>, vector<2x2x32xf32>,
    %c0_5 = arith.constant 0 : index
    %c0_6 = arith.constant 0 : index
    %c0_7 = arith.constant 0 : index
    %4 = vector.load %arg0[%c0_5, %c0_6, %c0_7] : memref<2x16x1xf32, #tpu.memory_space<vmem>>, vector<2x16x1xf32>
    %5 = vector.shape_cast %4 : vector<2x16x1xf32> to vector<2x16x1xf32>
    %6 = vector.broadcast %5 : vector<2x16x1xf32> to vector<2x16x32xf32>
    %c0_8 = arith.constant 0 : index
    %c2 = arith.constant 2 : index
    %c0_9 = arith.constant 0 : index
    %7 = vector.load %arg17[%c0_8, %c2, %c0_9] : memref<2x20x32xf32, #tpu.memory_space<vmem>>, vector<2x16x32xf32>
    tpu.vector_store %arg17[%c0_8, %c2, %c0_9], %6 {strides = array<i32>} : memref<2x20x32xf32, #tpu.memory_space<vmem>>, vector<2x16x32xf32>,
    %cst_10 = arith.constant 0.000000e+00 : f32
    %8 = vector.broadcast %cst_10 : f32 to vector<2x16x32xf32>
    %c0_11 = arith.constant 0 : index
    %c0_12 = arith.constant 0 : index
    %c0_13 = arith.constant 0 : index
    %9 = vector.load %arg17[%c0_11, %c0_12, %c0_13] : memref<2x20x32xf32, #tpu.memory_space<vmem>>, vector<2x16x32xf32>
    %c0_14 = arith.constant 0 : index
    %c0_15 = arith.constant 0 : index
    %c0_16 = arith.constant 0 : index
    %10 = vector.load %arg1[%c0_14, %c0_15, %c0_16] : memref<5x1x32xf32, #tpu.memory_space<vmem>>, vector<1x1x32xf32>
    %11 = vector.shape_cast %10 : vector<1x1x32xf32> to vector<1x32xf32>
    %12 = vector.shape_cast %11 : vector<1x32xf32> to vector<1x1x32xf32>
    %13 = vector.broadcast %12 : vector<1x1x32xf32> to vector<2x16x32xf32>
    %14 = arith.mulf %9, %13 : vector<2x16x32xf32>
    %15 = arith.addf %8, %14 : vector<2x16x32xf32>
    %c0_17 = arith.constant 0 : index
    %c1 = arith.constant 1 : index
    %c0_18 = arith.constant 0 : index
    %16 = vector.load %arg17[%c0_17, %c1, %c0_18] : memref<2x20x32xf32, #tpu.memory_space<vmem>>, vector<2x16x32xf32>
    %c1_19 = arith.constant 1 : index
    %c0_20 = arith.constant 0 : index
    %c0_21 = arith.constant 0 : index
    %17 = vector.load %arg1[%c1_19, %c0_20, %c0_21] : memref<5x1x32xf32, #tpu.memory_space<vmem>>, vector<1x1x32xf32>
    %18 = vector.shape_cast %17 : vector<1x1x32xf32> to vector<1x32xf32>
    %19 = vector.shape_cast %18 : vector<1x32xf32> to vector<1x1x32xf32>
    %20 = vector.broadcast %19 : vector<1x1x32xf32> to vector<2x16x32xf32>
    %21 = arith.mulf %16, %20 : vector<2x16x32xf32>
    %22 = arith.addf %15, %21 : vector<2x16x32xf32>
    %c0_22 = arith.constant 0 : index
    %c2_23 = arith.constant 2 : index
    %c0_24 = arith.constant 0 : index
    %23 = vector.load %arg17[%c0_22, %c2_23, %c0_24] : memref<2x20x32xf32, #tpu.memory_space<vmem>>, vector<2x16x32xf32>
    %c2_25 = arith.constant 2 : index
    %c0_26 = arith.constant 0 : index
    %c0_27 = arith.constant 0 : index
    %24 = vector.load %arg1[%c2_25, %c0_26, %c0_27] : memref<5x1x32xf32, #tpu.memory_space<vmem>>, vector<1x1x32xf32>
    %25 = vector.shape_cast %24 : vector<1x1x32xf32> to vector<1x32xf32>
    %26 = vector.shape_cast %25 : vector<1x32xf32> to vector<1x1x32xf32>
    %27 = vector.broadcast %26 : vector<1x1x32xf32> to vector<2x16x32xf32>
    %28 = arith.mulf %23, %27 : vector<2x16x32xf32>
    %29 = arith.addf %22, %28 : vector<2x16x32xf32>
    %c0_28 = arith.constant 0 : index
    %c3 = arith.constant 3 : index
    %c0_29 = arith.constant 0 : index
    %30 = vector.load %arg17[%c0_28, %c3, %c0_29] : memref<2x20x32xf32, #tpu.memory_space<vmem>>, vector<2x16x32xf32>
    %c3_30 = arith.constant 3 : index
    %c0_31 = arith.constant 0 : index
    %c0_32 = arith.constant 0 : index
    %31 = vector.load %arg1[%c3_30, %c0_31, %c0_32] : memref<5x1x32xf32, #tpu.memory_space<vmem>>, vector<1x1x32xf32>
    %32 = vector.shape_cast %31 : vector<1x1x32xf32> to vector<1x32xf32>
    %33 = vector.shape_cast %32 : vector<1x32xf32> to vector<1x1x32xf32>
    %34 = vector.broadcast %33 : vector<1x1x32xf32> to vector<2x16x32xf32>
    %35 = arith.mulf %30, %34 : vector<2x16x32xf32>
    %36 = arith.addf %29, %35 : vector<2x16x32xf32>
    %c0_33 = arith.constant 0 : index
    %c4 = arith.constant 4 : index
    %c0_34 = arith.constant 0 : index
    %37 = vector.load %arg17[%c0_33, %c4, %c0_34] : memref<2x20x32xf32, #tpu.memory_space<vmem>>, vector<2x16x32xf32>
    %c4_35 = arith.constant 4 : index
    %c0_36 = arith.constant 0 : index
    %c0_37 = arith.constant 0 : index
    %38 = vector.load %arg1[%c4_35, %c0_36, %c0_37] : memref<5x1x32xf32, #tpu.memory_space<vmem>>, vector<1x1x32xf32>
    %39 = vector.shape_cast %38 : vector<1x1x32xf32> to vector<1x32xf32>
    %40 = vector.shape_cast %39 : vector<1x32xf32> to vector<1x1x32xf32>
    %41 = vector.broadcast %40 : vector<1x1x32xf32> to vector<2x16x32xf32>
    %42 = arith.mulf %37, %41 : vector<2x16x32xf32>
    %43 = arith.addf %36, %42 : vector<2x16x32xf32>
    %cst_38 = arith.constant 0.000000e+00 : f32
    %44 = vector.broadcast %cst_38 : f32 to vector<2x2x32xf32>
    %c0_39 = arith.constant 0 : index
    %c0_40 = arith.constant 0 : index
    %c0_41 = arith.constant 0 : index
    %45 = vector.load %arg18[%c0_39, %c0_40, %c0_41] : memref<2x20x32xf32, #tpu.memory_space<vmem>>, vector<2x2x32xf32>
    tpu.vector_store %arg18[%c0_39, %c0_40, %c0_41], %44 {strides = array<i32>} : memref<2x20x32xf32, #tpu.memory_space<vmem>>, vector<2x2x32xf32>,
    %cst_42 = arith.constant 0.000000e+00 : f32
    %46 = vector.broadcast %cst_42 : f32 to vector<2x2x32xf32>
    %c0_43 = arith.constant 0 : index
    %c18_44 = arith.constant 18 : index
    %c0_45 = arith.constant 0 : index
    %47 = vector.load %arg18[%c0_43, %c18_44, %c0_45] : memref<2x20x32xf32, #tpu.memory_space<vmem>>, vector<2x2x32xf32>
    tpu.vector_store %arg18[%c0_43, %c18_44, %c0_45], %46 {strides = array<i32>} : memref<2x20x32xf32, #tpu.memory_space<vmem>>, vector<2x2x32xf32>,
    %c0_46 = arith.constant 0 : index
    %c0_47 = arith.constant 0 : index
    %48 = vector.load %arg2[%c0_46, %c0_47] : memref<1x32xf32, #tpu.memory_space<vmem>>, vector<1x32xf32>
    %49 = vector.shape_cast %48 : vector<1x32xf32> to vector<1x1x32xf32>
    %50 = vector.broadcast %49 : vector<1x1x32xf32> to vector<2x16x32xf32>
    %51 = arith.mulf %43, %50 : vector<2x16x32xf32>
    %c0_48 = arith.constant 0 : index
    %c0_49 = arith.constant 0 : index
    %52 = vector.load %arg3[%c0_48, %c0_49] : memref<1x32xf32, #tpu.memory_space<vmem>>, vector<1x32xf32>
    %53 = vector.shape_cast %52 : vector<1x32xf32> to vector<1x1x32xf32>
    %54 = vector.broadcast %53 : vector<1x1x32xf32> to vector<2x16x32xf32>
    %55 = arith.addf %51, %54 : vector<2x16x32xf32>
    %cst_50 = arith.constant 0.000000e+00 : f32
    %56 = vector.broadcast %cst_50 : f32 to vector<2x16x32xf32>
    %57 = arith.maximumf %55, %56 : vector<2x16x32xf32>
    %c0_51 = arith.constant 0 : index
    %c2_52 = arith.constant 2 : index
    %c0_53 = arith.constant 0 : index
    %58 = vector.load %arg18[%c0_51, %c2_52, %c0_53] : memref<2x20x32xf32, #tpu.memory_space<vmem>>, vector<2x16x32xf32>
    tpu.vector_store %arg18[%c0_51, %c2_52, %c0_53], %57 {strides = array<i32>} : memref<2x20x32xf32, #tpu.memory_space<vmem>>, vector<2x16x32xf32>,
    %c0_54 = arith.constant 0 : index
    %c0_55 = arith.constant 0 : index
    %c0_56 = arith.constant 0 : index
    %59 = vector.load %arg18[%c0_54, %c0_55, %c0_56] : memref<2x20x32xf32, #tpu.memory_space<vmem>>, vector<2x16x32xf32>
    %60 = vector.shape_cast %59 : vector<2x16x32xf32> to vector<32x32xf32>
    %c0_57 = arith.constant 0 : index
    %c1_58 = arith.constant 1 : index
    %c0_59 = arith.constant 0 : index
    %61 = vector.load %arg18[%c0_57, %c1_58, %c0_59] : memref<2x20x32xf32, #tpu.memory_space<vmem>>, vector<2x16x32xf32>
    %62 = vector.shape_cast %61 : vector<2x16x32xf32> to vector<32x32xf32>
    %c0_60 = arith.constant 0 : index
    %c2_61 = arith.constant 2 : index
    %c0_62 = arith.constant 0 : index
    %63 = vector.load %arg18[%c0_60, %c2_61, %c0_62] : memref<2x20x32xf32, #tpu.memory_space<vmem>>, vector<2x16x32xf32>
    %64 = vector.shape_cast %63 : vector<2x16x32xf32> to vector<32x32xf32>
    %c0_63 = arith.constant 0 : index
    %c3_64 = arith.constant 3 : index
    %c0_65 = arith.constant 0 : index
    %65 = vector.load %arg18[%c0_63, %c3_64, %c0_65] : memref<2x20x32xf32, #tpu.memory_space<vmem>>, vector<2x16x32xf32>
    %66 = vector.shape_cast %65 : vector<2x16x32xf32> to vector<32x32xf32>
    %c0_66 = arith.constant 0 : index
    %c4_67 = arith.constant 4 : index
    %c0_68 = arith.constant 0 : index
    %67 = vector.load %arg18[%c0_66, %c4_67, %c0_68] : memref<2x20x32xf32, #tpu.memory_space<vmem>>, vector<2x16x32xf32>
    %68 = vector.shape_cast %67 : vector<2x16x32xf32> to vector<32x32xf32>
    %69 = tpu.concatenate %60, %62, %64, %66, %68 in 1 : vector<32x32xf32>, vector<32x32xf32>, vector<32x32xf32>, vector<32x32xf32>, vector<32x32xf32> -> vector<32x160xf32>
    %70 = arith.truncf %69 : vector<32x160xf32> to vector<32x160xbf16>
    %c0_69 = arith.constant 0 : index
    %c0_70 = arith.constant 0 : index
    %71 = vector.load %arg4[%c0_69, %c0_70] : memref<160x64xbf16, #tpu.memory_space<vmem>>, vector<160x64xbf16>
    %cst_71 = arith.constant dense<0.000000e+00> : vector<32x64xf32>
    %72 = tpu.matmul %70, %71, %cst_71 {dimension_numbers = #tpu.dot_dimension_numbers<[1], [0], [0], [1], [0, 0, 1, 1], [], []>} : vector<32x160xbf16>, vector<160x64xbf16>, vector<32x64xf32> -> vector<32x64xf32>
    %cst_72 = arith.constant 0.000000e+00 : f32
    %73 = vector.broadcast %cst_72 : f32 to vector<2x1x64xf32>
    %c0_73 = arith.constant 0 : index
    %c0_74 = arith.constant 0 : index
    %c0_75 = arith.constant 0 : index
    %74 = vector.load %arg19[%c0_73, %c0_74, %c0_75] : memref<2x18x64xf32, #tpu.memory_space<vmem>>, vector<2x1x64xf32>
    tpu.vector_store %arg19[%c0_73, %c0_74, %c0_75], %73 {strides = array<i32>} : memref<2x18x64xf32, #tpu.memory_space<vmem>>, vector<2x1x64xf32>,
    %cst_76 = arith.constant 0.000000e+00 : f32
    %75 = vector.broadcast %cst_76 : f32 to vector<2x1x64xf32>
    %c0_77 = arith.constant 0 : index
    %c17 = arith.constant 17 : index
    %c0_78 = arith.constant 0 : index
    %76 = vector.load %arg19[%c0_77, %c17, %c0_78] : memref<2x18x64xf32, #tpu.memory_space<vmem>>, vector<2x1x64xf32>
    tpu.vector_store %arg19[%c0_77, %c17, %c0_78], %75 {strides = array<i32>} : memref<2x18x64xf32, #tpu.memory_space<vmem>>, vector<2x1x64xf32>,
    %c0_79 = arith.constant 0 : index
    %c0_80 = arith.constant 0 : index
    %77 = vector.load %arg5[%c0_79, %c0_80] : memref<1x64xf32, #tpu.memory_space<vmem>>, vector<1x64xf32>
    %78 = vector.broadcast %77 : vector<1x64xf32> to vector<32x64xf32>
    %79 = arith.mulf %72, %78 : vector<32x64xf32>
    %c0_81 = arith.constant 0 : index
    %c0_82 = arith.constant 0 : index
    %80 = vector.load %arg6[%c0_81, %c0_82] : memref<1x64xf32, #tpu.memory_space<vmem>>, vector<1x64xf32>
    %81 = vector.broadcast %80 : vector<1x64xf32> to vector<32x64xf32>
    %82 = arith.addf %79, %81 : vector<32x64xf32>
    %cst_83 = arith.constant 0.000000e+00 : f32
    %83 = vector.broadcast %cst_83 : f32 to vector<32x64xf32>
    %84 = arith.maximumf %82, %83 : vector<32x64xf32>
    %85 = vector.shape_cast %84 : vector<32x64xf32> to vector<2x16x64xf32>
    %c0_84 = arith.constant 0 : index
    %c1_85 = arith.constant 1 : index
    %c0_86 = arith.constant 0 : index
    %86 = vector.load %arg19[%c0_84, %c1_85, %c0_86] : memref<2x18x64xf32, #tpu.memory_space<vmem>>, vector<2x16x64xf32>
    tpu.vector_store %arg19[%c0_84, %c1_85, %c0_86], %85 {strides = array<i32>} : memref<2x18x64xf32, #tpu.memory_space<vmem>>, vector<2x16x64xf32>,
    %c0_87 = arith.constant 0 : index
    %c0_88 = arith.constant 0 : index
    %c0_89 = arith.constant 0 : index
    %87 = vector.load %arg19[%c0_87, %c0_88, %c0_89] : memref<2x18x64xf32, #tpu.memory_space<vmem>>, vector<2x16x64xf32>
    %88 = vector.shape_cast %87 : vector<2x16x64xf32> to vector<32x64xf32>
    %c0_90 = arith.constant 0 : index
    %c1_91 = arith.constant 1 : index
    %c0_92 = arith.constant 0 : index
    %89 = vector.load %arg19[%c0_90, %c1_91, %c0_92] : memref<2x18x64xf32, #tpu.memory_space<vmem>>, vector<2x16x64xf32>
    %90 = vector.shape_cast %89 : vector<2x16x64xf32> to vector<32x64xf32>
    %c0_93 = arith.constant 0 : index
    %c2_94 = arith.constant 2 : index
    %c0_95 = arith.constant 0 : index
    %91 = vector.load %arg19[%c0_93, %c2_94, %c0_95] : memref<2x18x64xf32, #tpu.memory_space<vmem>>, vector<2x16x64xf32>
    %92 = vector.shape_cast %91 : vector<2x16x64xf32> to vector<32x64xf32>
    %93 = tpu.concatenate %88, %90, %92 in 1 : vector<32x64xf32>, vector<32x64xf32>, vector<32x64xf32> -> vector<32x192xf32>
    %94 = arith.truncf %93 : vector<32x192xf32> to vector<32x192xbf16>
    %c0_96 = arith.constant 0 : index
    %c0_97 = arith.constant 0 : index
    %95 = vector.load %arg7[%c0_96, %c0_97] : memref<192x128xbf16, #tpu.memory_space<vmem>>, vector<192x128xbf16>
    %cst_98 = arith.constant dense<0.000000e+00> : vector<32x128xf32>
    %96 = tpu.matmul %94, %95, %cst_98 {dimension_numbers = #tpu.dot_dimension_numbers<[1], [0], [0], [1], [0, 0, 1, 1], [], []>} : vector<32x192xbf16>, vector<192x128xbf16>, vector<32x128xf32> -> vector<32x128xf32>
    %c0_99 = arith.constant 0 : index
    %c0_100 = arith.constant 0 : index
    %97 = vector.load %arg8[%c0_99, %c0_100] : memref<1x128xf32, #tpu.memory_space<vmem>>, vector<1x128xf32>
    %98 = vector.broadcast %97 : vector<1x128xf32> to vector<32x128xf32>
    %99 = arith.mulf %96, %98 : vector<32x128xf32>
    %c0_101 = arith.constant 0 : index
    %c0_102 = arith.constant 0 : index
    %100 = vector.load %arg9[%c0_101, %c0_102] : memref<1x128xf32, #tpu.memory_space<vmem>>, vector<1x128xf32>
    %101 = vector.broadcast %100 : vector<1x128xf32> to vector<32x128xf32>
    %102 = arith.addf %99, %101 : vector<32x128xf32>
    %cst_103 = arith.constant 0.000000e+00 : f32
    %103 = vector.broadcast %cst_103 : f32 to vector<32x128xf32>
    %104 = arith.maximumf %102, %103 : vector<32x128xf32>
    %105 = vector.shape_cast %104 : vector<32x128xf32> to vector<2x2048xf32>
    %106 = arith.truncf %105 : vector<2x2048xf32> to vector<2x2048xbf16>
    %c0_104 = arith.constant 0 : index
    %c0_105 = arith.constant 0 : index
    %107 = vector.load %arg10[%c0_104, %c0_105] : memref<2048x256xbf16, #tpu.memory_space<vmem>>, vector<2048x256xbf16>
    %cst_106 = arith.constant dense<0.000000e+00> : vector<2x256xf32>
    %108 = tpu.matmul %106, %107, %cst_106 {dimension_numbers = #tpu.dot_dimension_numbers<[1], [0], [0], [1], [0, 0, 1, 1], [], []>} : vector<2x2048xbf16>, vector<2048x256xbf16>, vector<2x256xf32> -> vector<2x256xf32>
    %c0_107 = arith.constant 0 : index
    %c0_108 = arith.constant 0 : index
    %109 = vector.load %arg11[%c0_107, %c0_108] : memref<1x256xf32, #tpu.memory_space<vmem>>, vector<1x256xf32>
    %110 = vector.broadcast %109 : vector<1x256xf32> to vector<2x256xf32>
    %111 = arith.addf %108, %110 : vector<2x256xf32>
    %cst_109 = arith.constant 0.000000e+00 : f32
    %112 = vector.broadcast %cst_109 : f32 to vector<2x256xf32>
    %113 = arith.maximumf %111, %112 : vector<2x256xf32>
    %114 = arith.truncf %113 : vector<2x256xf32> to vector<2x256xbf16>
    %c0_110 = arith.constant 0 : index
    %c0_111 = arith.constant 0 : index
    %115 = vector.load %arg12[%c0_110, %c0_111] : memref<256x64xbf16, #tpu.memory_space<vmem>>, vector<256x64xbf16>
    %cst_112 = arith.constant dense<0.000000e+00> : vector<2x64xf32>
    %116 = tpu.matmul %114, %115, %cst_112 {dimension_numbers = #tpu.dot_dimension_numbers<[1], [0], [0], [1], [0, 0, 1, 1], [], []>} : vector<2x256xbf16>, vector<256x64xbf16>, vector<2x64xf32> -> vector<2x64xf32>
    %c0_113 = arith.constant 0 : index
    %c0_114 = arith.constant 0 : index
    %117 = vector.load %arg13[%c0_113, %c0_114] : memref<1x64xf32, #tpu.memory_space<vmem>>, vector<1x64xf32>
    %118 = vector.broadcast %117 : vector<1x64xf32> to vector<2x64xf32>
    %119 = arith.addf %116, %118 : vector<2x64xf32>
    %cst_115 = arith.constant 0.000000e+00 : f32
    %120 = vector.broadcast %cst_115 : f32 to vector<2x64xf32>
    %121 = arith.maximumf %119, %120 : vector<2x64xf32>
    %c0_116 = arith.constant 0 : index
    %c0_117 = arith.constant 0 : index
    %122 = vector.load %arg14[%c0_116, %c0_117] : memref<1x64xf32, #tpu.memory_space<vmem>>, vector<1x64xf32>
    %123 = vector.broadcast %122 : vector<1x64xf32> to vector<2x64xf32>
    %124 = arith.mulf %121, %123 : vector<2x64xf32>
    %cst_118 = arith.constant dense<0.000000e+00> : vector<2xf32>
    %125 = vector.multi_reduction <add>, %124, %cst_118 [1] : vector<2x64xf32> to vector<2xf32>
    %126 = vector.shape_cast %125 : vector<2xf32> to vector<2x1xf32>
    %c0_119 = arith.constant 0 : index
    %c0_120 = arith.constant 0 : index
    %127 = vector.load %arg15[%c0_119, %c0_120] : memref<1x1xf32, #tpu.memory_space<vmem>>, vector<1x1xf32>
    %128 = vector.broadcast %127 : vector<1x1xf32> to vector<2x1xf32>
    %129 = arith.addf %126, %128 : vector<2x1xf32>
    %130 = arith.negf %129 : vector<2x1xf32>
    %131 = math.exp %130 : vector<2x1xf32>
    %cst_121 = arith.constant 1.000000e+00 : f32
    %132 = vector.broadcast %cst_121 : f32 to vector<2x1xf32>
    %133 = arith.addf %132, %131 : vector<2x1xf32>
    %134 = arith.divf %132, %133 : vector<2x1xf32>
    %c0_122 = arith.constant 0 : index
    %c0_123 = arith.constant 0 : index
    %135 = vector.load %arg16[%c0_122, %c0_123] : memref<2x1xf32, #tpu.memory_space<vmem>>, vector<2x1xf32>
    tpu.vector_store %arg16[%c0_122, %c0_123], %134 {strides = array<i32>} : memref<2x1xf32, #tpu.memory_space<vmem>>, vector<2x1xf32>,
    return
  }
}

</mosaic_0001>

<bundles_post_ra>
// kernel: cnn_forward.1
= control target key start
LH: loop header
LB: loop body
LE: loop exit
PB: predicated region body
PF: predicated region fallthrough
CT: control target
= control target key end

     0   :  { %s4198_s0 = inlined_call_operand.vmem [shape: f32[2,16,1], index: 0, kind: input, shape index: {}]   ;;  %s4199_s1 = inlined_call_operand.vmem [shape: f32[5,1,32], index: 1, kind: input, shape index: {}]   ;;  %s4200_s2 = inlined_call_operand.vmem [shape: f32[1,32], index: 2, kind: input, shape index: {}]   ;;  %s4201_s3 = inlined_call_operand.vmem [shape: f32[1,32], index: 3, kind: input, shape index: {}]   ;;  %s4202_s4 = inlined_call_operand.vmem [shape: bf16[160,64], index: 4, kind: input, shape index: {}]   ;;  %s4203_s5 = inlined_call_operand.vmem [shape: f32[1,64], index: 5, kind: input, shape index: {}]   ;;  %s4204_s6 = inlined_call_operand.vmem [shape: f32[1,64], index: 6, kind: input, shape index: {}]   ;;  %s4205_s7 = inlined_call_operand.vmem [shape: bf16[192,128], index: 7, kind: input, shape index: {}]   ;;  %s4206_s8 = inlined_call_operand.vmem [shape: f32[1,128], index: 8, kind: input, shape index: {}]   ;;  %s4207_s9 = inlined_call_operand.vmem [shape: f32[1,128], index: 9, kind: input, shape index: {}]   ;;  %s4208_s10 = inlined_call_operand.hbm [shape: bf16[2048,256], index: 10, kind: input, shape index: {}]   ;;  %s4209_s11 = inlined_call_operand.vmem [shape: f32[1,256], index: 11, kind: input, shape index: {}]   ;;  %s4210_s12 = inlined_call_operand.vmem [shape: bf16[256,64], index: 12, kind: input, shape index: {}]   ;;  %s4211_s13 = inlined_call_operand.vmem [shape: f32[1,64], index: 13, kind: input, shape index: {}]   ;;  %s4212_s14 = inlined_call_operand.vmem [shape: f32[1,64], index: 14, kind: input, shape index: {}]   ;;  %s4213_s15 = inlined_call_operand.<no memory space> [shape: f32[1,1], index: 15, kind: input, shape index: {}]   ;;  %s4214_s16 = inlined_call_operand.vmem [shape: f32[2,1], index: 16, kind: output, shape index: {}]  }
   0x1   :  { %4216 = sst [smem:[#allocation9_spill]] %s4198_s0  ;;  %v21_v0 = vstv %s4213_s15 }
   0x2   :  { %22 = vst [vmem:[#allocation5] sm:$0x1] %v21_v0 }
   0x3   :  { %23 = vsyncpa [#allocation7], 0  ;;  %s3799_s23 = smov [#allocation6]   ;;  %s3775_s27 = scalar_lea.hbm %s4208_s10, 32768 }
   0x4   :  { %s49_s24 = sshll.u32 %s3799_s23, 4  ;;  %p3776_p0 = scmp.ne.s32.totalorder %s4208_s10, %s3775_s27  ;;  %s50_s24 = int_to_ptr.vmem [resolvable:$true] %s49_s24 }
   0x5   :  { %p3779_p1 = scmp.lt.u32.totalorder %s3775_s27, %s4208_s10 }
   0x7   :  { %p3781_p2 = pnand %p3779_p1, %p3776_p0 }
   0x9   :  { %3784 = shalt.err (!%p3781_p2)
}
   0xa   :  { %s3785_s15 = scalar_lea.vmem %s50_s24, 32768  ;;  %p3790_p4 = scmp.lt.s32.totalorder %s50_s24, %s50_s24 }
   0xb   :  { %p3786_p3 = scmp.ne.s32.totalorder %s50_s24, %s3785_s15  ;;  %p3791_p5 = scmp.lt.s32.totalorder %s3785_s15, %s3785_s15 }
   0xd   :  { %p3792_p6 = por %p3791_p5, %p3790_p4 }
   0xf   :  { %p3793_p7 = pnand %p3792_p6, %p3786_p3 }
  0x11   :  { %3796 = shalt.err (!%p3793_p7)
}
  0x12   :  { %s3800_s17 = smov 128   ;;  %s3801_s18 = smov 8  }
  0x13   :  { %55 = dma.hbm_to_vmem [thread:$0]  %s4208_s10, 32768, %s50_s24, [#allocation7], %s3800_s17, %s3800_s17, %s3801_s18  }
  0x14   :  { %3797 = dma.done.wait [#allocation7], 32768  }
  0x15   :  { %3798 = vsyncadd [#allocation7], 4294934528  ;;  %vm70_vm0 = vcmask 254976   ;;  %v3802_v1 = vmov 0   ;;  %v3803_v2 = vmov 0.0   ;;  %s4217_s22 = sld [smem:[#allocation9_spill]] }
  0x16   :  { %3308 = vset.pattern.permute.xlu1 %v3802_v1  ;;  %3307 = vset.pattern.permute.xlu0 %v3802_v1  ;;  %72 = vst.msk [vmem:[#allocation2 + $0x18] sm:$0x3] %vm70_vm0, %v3803_v2  ;;  %71 = vst.msk [vmem:[#allocation2] sm:$0x3] %vm70_vm0, %v3803_v2  ;;  %v3349_v7 = vld [vmem:[%s4202_s4] sm:$0xff]   ;;  %v3350_v8 = vld [vmem:[%s4202_s4 + $0x8] sm:$0xff]  }
  0x17   :  { %73 = vst.msk [vmem:[#allocation2 + $0x12] sm:$0x3] %vm70_vm0, %v3803_v2  ;;  %74 = vst.msk [vmem:[#allocation2 + $0x2a] sm:$0x3] %vm70_vm0, %v3803_v2  ;;  %409 = vmatprep.subr.bf16.mxu1 %v3802_v1  ;;  %v3351_v9 = vld [vmem:[%s4202_s4 + $0x10] sm:$0xff]   ;;  %v3352_v10 = vld [vmem:[%s4202_s4 + $0x18] sm:$0xff]  }
  0x18   :  { %203 = vst.msk [vmem:[#allocation3] sm:$0x3] %vm70_vm0, %v3803_v2  ;;  %204 = vst.msk [vmem:[#allocation3 + $0x18] sm:$0x3] %vm70_vm0, %v3803_v2  ;;  %410 = vmatpush1.bf16.msra.mxu1 %v3349_v7  ;;  %v3353_v11 = vld [vmem:[%s4202_s4 + $0x20] sm:$0xff]   ;;  %v3354_v12 = vld [vmem:[%s4202_s4 + $0x28] sm:$0xff]  }
  0x19   :  { %205 = vst.msk [vmem:[#allocation3 + $0x12] sm:$0x3] %vm70_vm0, %v3803_v2  ;;  %206 = vst.msk [vmem:[#allocation3 + $0x2a] sm:$0x3] %vm70_vm0, %v3803_v2  ;;  %411 = vmatprep.subr.bf16.mxu1 %v3802_v1  ;;  %v3355_v13 = vld [vmem:[%s4202_s4 + $0x30] sm:$0xff]   ;;  %v3356_v14 = vld [vmem:[%s4202_s4 + $0x38] sm:$0xff]  }
  0x1a   :  { %vm99_vm1 = vcmask 261120   ;;  %v2931_v19 = vld [vmem:[%s4199_s1] ss:$0 sm:$0xff]  ;;  %v2933_v20 = vld [vmem:[%s4199_s1 + $0x1] ss:$0 sm:$0xff]  ;;  %s3804_s26 = smov 64  }
  0x1b   :  { %v77_v3 = vld [vmem:[%s4217_s22 + $0x10] sm:$0xff]  ;;  %v75_v4 = vld [vmem:[%s4217_s22] sm:$0xff]  ;;  %v78_v5 = vld [vmem:[%s4217_s22 + $0x18] sm:$0xff]  ;;  %s3806_s27 = smov 96   ;;  %vm309_vm2 = vcmask 523264   ;;  %vm314_vm3 = vcmask 785408  }
  0x1c   :  { %91 = vperm.xlu1 %3308, %v77_v3   ;;  %81 = vperm.xlu0 %3307, %v75_v4   ;;  %v76_v6 = vld [vmem:[%s4217_s22 + $0x8] sm:$0xff]  ;;  %v2935_v21 = vld [vmem:[%s4199_s1 + $0x2] ss:$0 sm:$0xff]  ;;  %v2937_v34 = vld [vmem:[%s4199_s1 + $0x3] ss:$0 sm:$0xff]  ;;  %vm458_vm4 = vcmask 516096  }
  0x1d   :  { %412 = vmatpush1.bf16.msra.mxu1 %v3350_v8  ;;  %v2939_v35 = vld [vmem:[%s4199_s1 + $0x4] ss:$0 sm:$0xff]  ;;  %461 = vst.msk [vmem:[#allocation4 + $0x11] sm:$0x1] %vm458_vm4, %v3803_v2  ;;  %459 = vst.msk [vmem:[#allocation4] sm:$0x1] %vm458_vm4, %v3803_v2 }
  0x1e   :  { %413 = vmatprep.subr.bf16.mxu1 %v3802_v1  ;;  %460 = vst.msk [vmem:[#allocation4 + $0x18] sm:$0x1] %vm458_vm4, %v3803_v2  ;;  %462 = vst.msk [vmem:[#allocation4 + $0x29] sm:$0x1] %vm458_vm4, %v3803_v2  ;;  %v3362_v2 = vld [vmem:[%s4205_s7 + $0x18] sm:$0xff]   ;;  %vm2906_vm5 = vcmask 517120  }
  0x1f   :  { %vm2924_vm6 = vcmask 1024  }
  0x20   :  { %96 = vperm.xlu1 %3308, %v78_v5   ;;  %86 = vperm.xlu0 %3307, %v76_v6  }
  0x21   :  { %414 = vmatpush1.bf16.msra.mxu1 %v3351_v9  ;;  %v2940_v9 = vld [vmem:[%s4200_s2] ss:$0 sm:$0xff] }
  0x22   :  { %415 = vmatprep.subr.bf16.mxu1 %v3802_v1 }
  0x25   :  { %416 = vmatpush1.bf16.msra.mxu1 %v3352_v10 }
  0x26   :  { %417 = vmatprep.subr.bf16.mxu1 %v3802_v1 }
  0x29   :  { %418 = vmatpush1.bf16.msra.mxu1 %v3353_v11 }
  0x2a   :  { %419 = vmatprep.subr.bf16.mxu1 %v3802_v1 }
  0x2d   :  { %420 = vmatpush1.bf16.msra.mxu1 %v3354_v12 }
  0x2e   :  { %421 = vmatprep.subr.bf16.mxu1 %v3802_v1 }
  0x31   :  { %422 = vmatpush1.bf16.msra.mxu1 %v3355_v13 }
  0x32   :  { %423 = vmatprep.subr.bf16.mxu1 %v3802_v1 }
  0x35   :  { %424 = vmatpush1.bf16.msra.mxu1 %v3356_v14 }
  0x36   :  { %425 = vmatprep.subr.bf16.mxu1 %v3802_v1 }
  0x9b   :  { %v92_v15 = vpop.permute.xlu1 %91  ;;  %v82_v16 = vpop.permute.xlu0 %81 }
  0x9c   :  { %102 = vst.msk [vmem:[#allocation2 + $0x1a] sm:$0xff] %vm99_vm1, %v92_v15  ;;  %100 = vst.msk [vmem:[#allocation2 + $0x2] sm:$0xff] %vm99_vm1, %v82_v16  ;;  %v2941_v16 = vld [vmem:[%s4201_s3] ss:$0 sm:$0xff] }
  0x9f   :  { %v97_v17 = vpop.permute.xlu1 %96  ;;  %v87_v18 = vpop.permute.xlu0 %86 }
  0xa0   :  { %103 = vst.msk [vmem:[#allocation2 + $0x22] sm:$0xff] %vm99_vm1, %v97_v17  ;;  %101 = vst.msk [vmem:[#allocation2 + $0xa] sm:$0xff] %vm99_vm1, %v87_v18 }
  0xa3   :  { %v106_v22 = vld [vmem:[#allocation2 + $0x18] sm:$0xff]  ;;  %v104_v28 = vld [vmem:[#allocation2] sm:$0xff] }
  0xa4   :  { %v125_v23 = vld [vmem:[#allocation2 + $0x19] sm:$0xff]  ;;  %v117_v25 = vmul.f32 %v2931_v19, %v106_v22  ;;  %v123_v29 = vld [vmem:[#allocation2 + $0x1] sm:$0xff]  ;;  %v115_v31 = vmul.f32 %v2931_v19, %v104_v28 }
  0xa5   :  { %v145_v24 = vld [vmem:[#allocation2 + $0x1a] sm:$0xff]  ;;  %v137_v26 = vmul.f32 %v2933_v20, %v125_v23  ;;  %v143_v30 = vld [vmem:[#allocation2 + $0x2] sm:$0xff]  ;;  %v135_v32 = vmul.f32 %v2933_v20, %v123_v29 }
  0xa6   :  { %v157_v27 = vmul.f32 %v2935_v21, %v145_v24  ;;  %v155_v37 = vmul.f32 %v2935_v21, %v143_v30 }
  0xa7   :  { %v141_v33 = vadd.f32 %v137_v26, %v117_v25  ;;  %v139_v36 = vadd.f32 %v135_v32, %v115_v31  ;;  %v107_v38 = vld [vmem:[#allocation2 + $0x20] sm:$0xff]  ;;  %v105_v51 = vld [vmem:[#allocation2 + $0x8] sm:$0xff] }
  0xa8   :  { %v126_v39 = vld [vmem:[#allocation2 + $0x21] sm:$0xff]  ;;  %v118_v42 = vmul.f32 %v2931_v19, %v107_v38  ;;  %v124_v52 = vld [vmem:[#allocation2 + $0x9] sm:$0xff]  ;;  %v116_v55 = vmul.f32 %v2931_v19, %v105_v51 }
  0xa9   :  { %v146_v40 = vld [vmem:[#allocation2 + $0x22] sm:$0xff]  ;;  %v161_v41 = vadd.f32 %v157_v27, %v141_v33  ;;  %v138_v43 = vmul.f32 %v2933_v20, %v126_v39  ;;  %v159_v48 = vadd.f32 %v155_v37, %v139_v36  ;;  %v136_v56 = vmul.f32 %v2933_v20, %v124_v52  ;;  %v144_v57 = vld [vmem:[#allocation2 + $0xa] sm:$0xff] }
  0xaa   :  { %v158_v44 = vmul.f32 %v2935_v21, %v146_v40  ;;  %v165_v45 = vld [vmem:[#allocation2 + $0x1b] sm:$0xff]  ;;  %v166_v46 = vld [vmem:[#allocation2 + $0x23] sm:$0xff]  ;;  %v164_v61 = vld [vmem:[#allocation2 + $0xb] sm:$0xff]  ;;  %v156_v4 = vmul.f32 %v2935_v21, %v144_v57 }
  0xab   :  { %v185_v47 = vld [vmem:[#allocation2 + $0x1c] sm:$0xff]  ;;  %v177_v49 = vmul.f32 %v2937_v34, %v165_v45  ;;  %v142_v53 = vadd.f32 %v138_v43, %v118_v42  ;;  %v178_v54 = vmul.f32 %v2937_v34, %v166_v46  ;;  %v186_v60 = vld [vmem:[#allocation2 + $0x24] sm:$0xff]  ;;  %v140_v3 = vadd.f32 %v136_v56, %v116_v55  ;;  %v184_v7 = vld [vmem:[#allocation2 + $0xc] sm:$0xff] }
  0xac   :  { %v197_v50 = vmul.f32 %v2939_v35, %v185_v47  ;;  %v163_v58 = vld [vmem:[#allocation2 + $0x3] sm:$0xff]  ;;  %v198_v11 = vmul.f32 %v2939_v35, %v186_v60  ;;  %v176_v13 = vmul.f32 %v2937_v34, %v164_v61  ;;  %v196_v19 = vmul.f32 %v2939_v35, %v184_v7 }
  0xad   :  { %v181_v59 = vadd.f32 %v177_v49, %v161_v41  ;;  %v175_v62 = vmul.f32 %v2937_v34, %v163_v58  ;;  %v183_v63 = vld [vmem:[#allocation2 + $0x4] sm:$0xff]  ;;  %v162_v0 = vadd.f32 %v158_v44, %v142_v53  ;;  %v160_v12 = vadd.f32 %v156_v4, %v140_v3 }
  0xae   :  { %v195_v8 = vmul.f32 %v2939_v35, %v183_v63  ;;  %v3357_v32 = vld [vmem:[%s4202_s4 + $0x40] sm:$0xff]   ;;  %v3358_v33 = vld [vmem:[%s4202_s4 + $0x48] sm:$0xff]   ;;  %s3805_s4 = smov 32  }
  0xaf   :  { %v201_v5 = vadd.f32 %v197_v50, %v181_v59  ;;  %v179_v6 = vadd.f32 %v175_v62, %v159_v48  ;;  %v182_v10 = vadd.f32 %v178_v54, %v162_v0  ;;  %v180_v18 = vadd.f32 %v176_v13, %v160_v12  ;;  %426 = vmatpush1.bf16.msra.mxu1 %v3357_v32  ;;  %v3359_v32 = vld [vmem:[%s4205_s7] sm:$0xff]  }
  0xb0   :  { %427 = vmatprep.subr.bf16.mxu1 %v3802_v1 }
  0xb1   :  { %v216_v14 = vmul.f32 %v2940_v9, %v201_v5  ;;  %v199_v15 = vadd.f32 %v195_v8, %v179_v6  ;;  %v202_v17 = vadd.f32 %v198_v11, %v182_v10  ;;  %v200_v23 = vadd.f32 %v196_v19, %v180_v18 }
  0xb3   :  { %v227_v20 = vadd.f32 %v2941_v16, %v216_v14  ;;  %v214_v21 = vmul.f32 %v2940_v9, %v199_v15  ;;  %v217_v22 = vmul.f32 %v2940_v9, %v202_v17  ;;  %v215_v27 = vmul.f32 %v2940_v9, %v200_v23  ;;  %428 = vmatpush1.bf16.msra.mxu1 %v3358_v33  ;;  %v3360_v33 = vld [vmem:[%s4205_s7 + $0x8] sm:$0xff]  }
  0xb4   :  { %631 = vmatprep.subr.bf16.mxu1 %v3802_v1 }
  0xb5   :  { %v231_v24 = vmax.f32 %v227_v20, 0.0  ;;  %v225_v25 = vadd.f32 %v2941_v16, %v214_v21  ;;  %v228_v26 = vadd.f32 %v2941_v16, %v217_v22  ;;  %v226_v30 = vadd.f32 %v2941_v16, %v215_v27 }
  0xb7   :  { %235 = vst.msk [vmem:[#allocation3 + $0x1a] sm:$0xff] %vm99_vm1, %v231_v24  ;;  %v229_v28 = vmax.f32 %v225_v25, 0.0  ;;  %v232_v29 = vmax.f32 %v228_v26, 0.0  ;;  %v230_v31 = vmax.f32 %v226_v30, 0.0 }
  0xb9   :  { %233 = vst.msk [vmem:[#allocation3 + $0x2] sm:$0xff] %vm99_vm1, %v229_v28  ;;  %236 = vst.msk [vmem:[#allocation3 + $0x22] sm:$0xff] %vm99_vm1, %v232_v29 }
  0xba   :  { %234 = vst.msk [vmem:[#allocation3 + $0xa] sm:$0xff] %vm99_vm1, %v230_v31 }
  0xbe   :  { %v243_v46 = vld [vmem:[#allocation3 + $0x19] sm:$0xff] }
  0xbf   :  { %v247_v53 = vld [vmem:[#allocation3 + $0x1a] sm:$0xff] }
  0xc0   :  { %v245_v34 = vld [vmem:[#allocation3 + $0x2] sm:$0xff]  ;;  %v239_v19 = vld [vmem:[#allocation3 + $0x18] sm:$0xff] }
  0xc1   :  { %v253_v35 = vld [vmem:[#allocation3 + $0x4] sm:$0xff]  ;;  %v254_v36 = vld [vmem:[#allocation3 + $0xc] sm:$0xff]  ;;  %v251_v49 = vld [vmem:[#allocation3 + $0x1b] sm:$0xff] }
  0xc2   :  { %v246_v37 = vld [vmem:[#allocation3 + $0xa] sm:$0xff]  ;;  %v320_v38 = vpack.c.bf16 %v254_v36, %v253_v35  ;;  %v241_v40 = vld [vmem:[#allocation3 + $0x1] sm:$0xff]  ;;  %v3364_v36 = vld [vmem:[%s4205_s7 + $0x28] sm:$0xff]  }
  0xc3   :  { %v3314_v39 = vpack.i.bf16 %v246_v37, %v245_v34  ;;  %v242_v41 = vld [vmem:[#allocation3 + $0x9] sm:$0xff]  ;;  %v244_v43 = vld [vmem:[#allocation3 + $0x21] sm:$0xff] }
  0xc4   :  { %v3309_v42 = vpack.i.bf16 %v242_v41, %v241_v40  ;;  %2952 = vmatprep.mubr.msk.bf16.mxu1 %vm99_vm1, %v320_v38  ;;  %v249_v44 = vld [vmem:[#allocation3 + $0x3] sm:$0xff]  ;;  %v250_v45 = vld [vmem:[#allocation3 + $0xb] sm:$0xff]  ;;  %v3324_v47 = vpack.i.bf16 %v244_v43, %v243_v46  ;;  %v3368_v40 = vld [vmem:[%s4205_s7 + $0x48] sm:$0xff]  }
  0xc5   :  { %3315 = vrot.lane.b32.xlu1 %v3314_v39, %s3804_s26  ;;  %v3319_v48 = vpack.i.bf16 %v250_v45, %v249_v44  ;;  %v252_v50 = vld [vmem:[#allocation3 + $0x23] sm:$0xff]  ;;  %v3363_v35 = vld [vmem:[%s4205_s7 + $0x20] sm:$0xff]  }
  0xc6   :  { %3310 = vrot.lane.b32.xlu0 %v3309_v42, %s3805_s4  ;;  %v248_v51 = vld [vmem:[#allocation3 + $0x22] sm:$0xff]  ;;  %v3334_v52 = vpack.i.bf16 %v252_v50, %v251_v49  ;;  %v3367_v39 = vld [vmem:[%s4205_s7 + $0x40] sm:$0xff]  }
  0xc7   :  { %v3329_v54 = vpack.i.bf16 %v248_v51, %v247_v53  ;;  %v237_v61 = vld [vmem:[#allocation3] sm:$0xff]  ;;  %v238_v62 = vld [vmem:[#allocation3 + $0x8] sm:$0xff]  ;;  %v2954_v42 = vld [vmem:[%s4203_s5] ss:$0 sm:$0xff] }
  0xc8   :  { %v255_v7 = vld [vmem:[#allocation3 + $0x1c] sm:$0xff]  ;;  %v256_v8 = vld [vmem:[#allocation3 + $0x24] sm:$0xff]  ;;  %v2955_v44 = vld [vmem:[%s4204_s6] ss:$0 sm:$0xff] }
  0xc9   :  { %3325 = vrot.lane.b32.xlu1 %v3324_v47, %s3805_s4  ;;  %v322_v18 = vpack.c.bf16 %v256_v8, %v255_v7  ;;  %v240_v20 = vld [vmem:[#allocation3 + $0x20] sm:$0xff]  ;;  %v3366_v38 = vld [vmem:[%s4205_s7 + $0x38] sm:$0xff]  }
  0xca   :  { %3320 = vrot.lane.b32.xlu0 %v3319_v48, %s3806_s27  ;;  %v3361_v34 = vld [vmem:[%s4205_s7 + $0x10] sm:$0xff]   ;;  %v3370_v53 = vld [vmem:[%s4205_s7 + $0x58] sm:$0xff]  }
  0xcb   :  { %v3365_v37 = vld [vmem:[%s4205_s7 + $0x30] sm:$0xff]  }
  0xcc   :  { %v3369_v41 = vld [vmem:[%s4205_s7 + $0x50] sm:$0xff]  }
  0xcd   :  { %3335 = vrot.lane.b32.xlu1 %v3334_v52, %s3806_s27  ;;  %v3373_v8 = vld [vmem:[#allocation6 + $0x4] ss:$8 sps:$4 sm:$0xff]  }
  0xce   :  { %3330 = vrot.lane.b32.xlu0 %v3329_v54, %s3804_s26 }
 0x137   :  { %v3316_v55 = vpop.permute.xlu1 %3315 }
 0x138   :  { %v3311_v56 = vpop.permute.xlu0 %3310  ;;  %v3318_v59 = vunpack.i.h.bf16 %v3316_v55  ;;  %v3317_v60 = vunpack.i.l.bf16 %v3316_v55 }
 0x139   :  { %v3313_v57 = vunpack.i.h.bf16 %v3311_v56  ;;  %v3312_v58 = vunpack.i.l.bf16 %v3311_v56 }
 0x13b   :  { %v305_v63 = vsel %vm99_vm1, %v237_v61, %v3312_v58  ;;  %v306_v0 = vsel %vm99_vm1, %v238_v62, %v3313_v57  ;;  %v3326_v3 = vpop.permute.xlu1 %3325 }
 0x13c   :  { %v3321_v4 = vpop.permute.xlu0 %3320  ;;  %v3328_v9 = vunpack.i.h.bf16 %v3326_v3  ;;  %v3327_v10 = vunpack.i.l.bf16 %v3326_v3  ;;  %v310_v11 = vsel %vm309_vm2, %v305_v63, %v3317_v60  ;;  %v311_v12 = vsel %vm309_vm2, %v306_v0, %v3318_v59 }
 0x13d   :  { %v3323_v5 = vunpack.i.h.bf16 %v3321_v4  ;;  %v3322_v6 = vunpack.i.l.bf16 %v3321_v4 }
 0x13e   :  { %v308_v25 = vsel %vm99_vm1, %v240_v20, %v3328_v9  ;;  %v307_v26 = vsel %vm99_vm1, %v239_v19, %v3327_v10  ;;  %v3374_v9 = vld [vmem:[#allocation6 + $0x304] ss:$8 sps:$4 sm:$0xff]   ;;  %v3376_v10 = vld [vmem:[#allocation6 + $0x300] ss:$8 sps:$4 sm:$0xff]   ;;  %v3394_v19 = vld [vmem:[#allocation6 + $0x330] ss:$8 sps:$4 sm:$0xff]  }
 0x13f   :  { %v3336_v13 = vpop.permute.xlu1 %3335  ;;  %v315_v14 = vsel %vm314_vm3, %v310_v11, %v3322_v6  ;;  %v316_v15 = vsel %vm314_vm3, %v311_v12, %v3323_v5  ;;  %2513 = vmatprep.subr.bf16.mxu0 %v3374_v9  ;;  %v3380_v11 = vld [vmem:[#allocation6 + $0x314] ss:$8 sps:$4 sm:$0xff]   ;;  %v3382_v12 = vld [vmem:[#allocation6 + $0x310] ss:$8 sps:$4 sm:$0xff]   ;;  %v3398_v20 = vld [vmem:[#allocation6 + $0x344] ss:$8 sps:$4 sm:$0xff]  }
 0x140   :  { %v3331_v16 = vpop.permute.xlu0 %3330  ;;  %v319_v17 = vpack.c.bf16 %v316_v15, %v315_v14  ;;  %v3338_v21 = vunpack.i.h.bf16 %v3336_v13  ;;  %v3337_v22 = vunpack.i.l.bf16 %v3336_v13  ;;  %2514 = vmatpush1.bf16.msra.mxu0 %v3376_v10  ;;  %v3386_v13 = vld [vmem:[#allocation6 + $0x324] ss:$8 sps:$4 sm:$0xff]   ;;  %v3436_v9 = vld [vmem:[#allocation6 + $0x3a0] ss:$8 sps:$4 sm:$0xff]   ;;  %v3439_v10 = vld [vmem:[#allocation6 + $0xb4] ss:$8 sps:$4 sm:$0xff]  }
 0x141   :  { %v3333_v23 = vunpack.i.h.bf16 %v3331_v16  ;;  %v3332_v24 = vunpack.i.l.bf16 %v3331_v16  ;;  %2515 = vmatprep.subr.bf16.mxu0 %v3380_v11  ;;  %v3437_v11 = vld [vmem:[#allocation6 + $0xb0] ss:$8 sps:$4 sm:$0xff]  }
 0x142   :  { %442 = vmatmul.mubr.bf16.vlgmr.msra.gmra.mrb[0].mxu1 %v319_v17  ;;  %v3388_v17 = vld [vmem:[#allocation6 + $0x320] ss:$8 sps:$4 sm:$0xff]  }
 0x143   :  { %v313_v27 = vsel %vm309_vm2, %v308_v25, %v3333_v23  ;;  %v312_v28 = vsel %vm309_vm2, %v307_v26, %v3332_v24  ;;  %2953 = vmatprep.mubr.msk.bf16.mxu1 %vm99_vm1, %v322_v18  ;;  %632 = vmatpush1.bf16.msra.mxu1 %v3359_v32  ;;  %v3392_v18 = vld [vmem:[#allocation6 + $0x334] ss:$8 sps:$4 sm:$0xff]   ;;  %v3406_v23 = vld [vmem:[#allocation6 + $0x350] ss:$8 sps:$4 sm:$0xff]   ;;  %v3410_v24 = vld [vmem:[#allocation6 + $0x364] ss:$8 sps:$4 sm:$0xff]  }
 0x144   :  { %v317_v29 = vsel %vm314_vm3, %v312_v28, %v3337_v22  ;;  %v318_v30 = vsel %vm314_vm3, %v313_v27, %v3338_v21  ;;  %633 = vmatprep.subr.bf16.mxu1 %v3802_v1  ;;  %2516 = vmatpush1.bf16.msra.mxu0 %v3382_v12  ;;  %v3400_v21 = vld [vmem:[#allocation6 + $0x340] ss:$8 sps:$4 sm:$0xff]   ;;  %v3404_v22 = vld [vmem:[#allocation6 + $0x354] ss:$8 sps:$4 sm:$0xff]   ;;  %v3418_v27 = vld [vmem:[#allocation6 + $0x370] ss:$8 sps:$4 sm:$0xff]  }
 0x145   :  { %v321_v31 = vpack.c.bf16 %v318_v30, %v317_v29  ;;  %2517 = vmatprep.subr.bf16.mxu0 %v3386_v13  ;;  %v3412_v25 = vld [vmem:[#allocation6 + $0x360] ss:$8 sps:$4 sm:$0xff]   ;;  %v3416_v26 = vld [vmem:[#allocation6 + $0x374] ss:$8 sps:$4 sm:$0xff]   ;;  %v3422_v28 = vld [vmem:[#allocation6 + $0x384] ss:$8 sps:$4 sm:$0xff]  }
 0x146   :  { %v3424_v29 = vld [vmem:[#allocation6 + $0x380] ss:$8 sps:$4 sm:$0xff]   ;;  %v3428_v30 = vld [vmem:[#allocation6 + $0x394] ss:$8 sps:$4 sm:$0xff]   ;;  %v3442_v13 = vld [vmem:[#allocation6 + $0x3b0] ss:$8 sps:$4 sm:$0xff]  }
 0x147   :  { %634 = vmatpush1.bf16.msra.mxu1 %v3360_v33  ;;  %v3440_v12 = vld [vmem:[#allocation6 + $0x3b4] ss:$8 sps:$4 sm:$0xff]  }
 0x148   :  { %635 = vmatprep.subr.bf16.mxu1 %v3802_v1  ;;  %2518 = vmatpush1.bf16.msra.mxu0 %v3388_v17  ;;  %v3448_v17 = vld [vmem:[#allocation6 + $0x3c0] ss:$8 sps:$4 sm:$0xff]  }
 0x149   :  { %2519 = vmatprep.subr.bf16.mxu0 %v3392_v18  ;;  %v3451_v18 = vld [vmem:[#allocation6 + $0xd4] ss:$8 sps:$4 sm:$0xff]  }
 0x14a   :  { %450 = vmatmul.mubr.bf16.gmra.mrb[4].mxu1 %v321_v31 }
 0x14b   :  { %636 = vmatpush1.bf16.msra.mxu1 %v3361_v34 }
 0x14c   :  { %637 = vmatprep.subr.bf16.mxu1 %v3802_v1  ;;  %2520 = vmatpush1.bf16.msra.mxu0 %v3394_v19  ;;  %v3449_v19 = vld [vmem:[#allocation6 + $0xd0] ss:$8 sps:$4 sm:$0xff]  }
 0x14d   :  { %2521 = vmatprep.subr.bf16.mxu0 %v3398_v20  ;;  %v3452_v20 = vld [vmem:[#allocation6 + $0x3d4] ss:$8 sps:$4 sm:$0xff]  }
 0x14f   :  { %638 = vmatpush1.bf16.msra.mxu1 %v3362_v2 }
 0x150   :  { %639 = vmatprep.subr.bf16.mxu1 %v3802_v1  ;;  %2522 = vmatpush1.bf16.msra.mxu0 %v3400_v21  ;;  %v3454_v21 = vld [vmem:[#allocation6 + $0x3d0] ss:$8 sps:$4 sm:$0xff]  }
 0x151   :  { %2523 = vmatprep.subr.bf16.mxu0 %v3404_v22  ;;  %v3457_v22 = vld [vmem:[#allocation6 + $0xe4] ss:$8 sps:$4 sm:$0xff]  }
 0x153   :  { %640 = vmatpush1.bf16.msra.mxu1 %v3363_v35 }
 0x154   :  { %641 = vmatprep.subr.bf16.mxu1 %v3802_v1  ;;  %2524 = vmatpush1.bf16.msra.mxu0 %v3406_v23  ;;  %v3455_v23 = vld [vmem:[#allocation6 + $0xe0] ss:$8 sps:$4 sm:$0xff]  }
 0x155   :  { %2525 = vmatprep.subr.bf16.mxu0 %v3410_v24  ;;  %v3458_v24 = vld [vmem:[#allocation6 + $0x3e4] ss:$8 sps:$4 sm:$0xff]  }
 0x157   :  { %642 = vmatpush1.bf16.msra.mxu1 %v3364_v36 }
 0x158   :  { %643 = vmatprep.subr.bf16.mxu1 %v3802_v1  ;;  %2526 = vmatpush1.bf16.msra.mxu0 %v3412_v25  ;;  %v3460_v25 = vld [vmem:[#allocation6 + $0x3e0] ss:$8 sps:$4 sm:$0xff]  }
 0x159   :  { %2527 = vmatprep.subr.bf16.mxu0 %v3416_v26  ;;  %v3463_v26 = vld [vmem:[#allocation6 + $0xf4] ss:$8 sps:$4 sm:$0xff]  }
 0x15b   :  { %644 = vmatpush1.bf16.msra.mxu1 %v3365_v37 }
 0x15c   :  { %645 = vmatprep.subr.bf16.mxu1 %v3802_v1  ;;  %2528 = vmatpush1.bf16.msra.mxu0 %v3418_v27  ;;  %v3461_v27 = vld [vmem:[#allocation6 + $0xf0] ss:$8 sps:$4 sm:$0xff]  }
 0x15d   :  { %2529 = vmatprep.subr.bf16.mxu0 %v3422_v28  ;;  %v3464_v28 = vld [vmem:[#allocation6 + $0x3f4] ss:$8 sps:$4 sm:$0xff]  }
 0x15f   :  { %646 = vmatpush1.bf16.msra.mxu1 %v3366_v38 }
 0x160   :  { %647 = vmatprep.subr.bf16.mxu1 %v3802_v1  ;;  %2530 = vmatpush1.bf16.msra.mxu0 %v3424_v29  ;;  %v3466_v29 = vld [vmem:[#allocation6 + $0x3f0] ss:$8 sps:$4 sm:$0xff]  }
 0x161   :  { %2531 = vmatprep.subr.bf16.mxu0 %v3428_v30  ;;  %v3469_v30 = vld [vmem:[#allocation6 + $0x104] ss:$8 sps:$4 sm:$0xff]  }
 0x163   :  { %648 = vmatpush1.bf16.msra.mxu1 %v3367_v39  ;;  %v3371_v39 = vld [vmem:[#allocation6] ss:$8 sps:$4 sm:$0xff]  }
 0x164   :  { %649 = vmatprep.subr.bf16.mxu1 %v3802_v1 }
 0x167   :  { %650 = vmatpush1.bf16.msra.mxu1 %v3368_v40 }
 0x168   :  { %651 = vmatprep.subr.bf16.mxu1 %v3802_v1 }
 0x16b   :  { %652 = vmatpush1.bf16.msra.mxu1 %v3369_v41  ;;  %v3379_v41 = vld [vmem:[#allocation6 + $0x14] ss:$8 sps:$4 sm:$0xff]  }
 0x16c   :  { %653 = vmatprep.subr.bf16.mxu1 %v3802_v1 }
 0x16f   :  { %654 = vmatpush1.bf16.msra.mxu1 %v3370_v53  ;;  %v3391_v53 = vld [vmem:[#allocation6 + $0x34] ss:$8 sps:$4 sm:$0xff]  }
 0x170   :  { %2390 = vmatprep.subr.bf16.mxu1 %v3373_v8  ;;  %v3434_v8 = vld [vmem:[#allocation6 + $0x3a4] ss:$8 sps:$4 sm:$0xff]  }
 0x215   :  { %v443_v43 = vpop.f32.mrb[0].mxu1 }
 0x216   :  { %v470_v45 = vmul.f32 %v2954_v42, %v443_v43  ;;  %v445_v46 = vpop.f32.mrb[1].mxu1  ;;  %v3377_v43 = vld [vmem:[#allocation6 + $0x10] ss:$8 sps:$4 sm:$0xff]  }
 0x217   :  { %v446_v47 = vpop.f32.mrb[2].mxu1 }
 0x218   :  { %v481_v48 = vadd.f32 %v2955_v44, %v470_v45  ;;  %v471_v49 = vmul.f32 %v2954_v42, %v446_v47  ;;  %v448_v50 = vpop.f32.mrb[3].mxu1  ;;  %v3385_v45 = vld [vmem:[#allocation6 + $0x24] ss:$8 sps:$4 sm:$0xff]  }
 0x21a   :  { %v485_v51 = vmax.f32 %v481_v48, 0.0  ;;  %v482_v52 = vadd.f32 %v2955_v44, %v471_v49 }
 0x21c   :  { %489 = vst.msk [vmem:[#allocation4 + $0x1] sm:$0xff] %vm309_vm2, %v485_v51  ;;  %v486_v1 = vmax.f32 %v482_v52, 0.0  ;;  %v3383_v52 = vld [vmem:[#allocation6 + $0x20] ss:$8 sps:$4 sm:$0xff]  }
 0x21d   :  { %v451_v54 = vpop.f32.mrb[4].mxu1 }
 0x21e   :  { %490 = vst.msk [vmem:[#allocation4 + $0x9] sm:$0xff] %vm309_vm2, %v486_v1  ;;  %v472_v55 = vmul.f32 %v2954_v42, %v451_v54  ;;  %v453_v56 = vpop.f32.mrb[5].mxu1  ;;  %v3389_v54 = vld [vmem:[#allocation6 + $0x30] ss:$8 sps:$4 sm:$0xff]  }
 0x21f   :  { %v454_v57 = vpop.f32.mrb[6].mxu1  ;;  %v3395_v56 = vld [vmem:[#allocation6 + $0x40] ss:$8 sps:$4 sm:$0xff]  }
 0x220   :  { %v483_v58 = vadd.f32 %v2955_v44, %v472_v55  ;;  %v473_v59 = vmul.f32 %v2954_v42, %v454_v57  ;;  %v456_v60 = vpop.f32.mrb[7].mxu1  ;;  %v3397_v55 = vld [vmem:[#allocation6 + $0x44] ss:$8 sps:$4 sm:$0xff]   ;;  %v3403_v57 = vld [vmem:[#allocation6 + $0x54] ss:$8 sps:$4 sm:$0xff]  }
 0x221   :  { %v3407_v60 = vld [vmem:[#allocation6 + $0x60] ss:$8 sps:$4 sm:$0xff]  }
 0x222   :  { %v487_v61 = vmax.f32 %v483_v58, 0.0  ;;  %v484_v62 = vadd.f32 %v2955_v44, %v473_v59  ;;  %v3401_v58 = vld [vmem:[#allocation6 + $0x50] ss:$8 sps:$4 sm:$0xff]   ;;  %v3409_v59 = vld [vmem:[#allocation6 + $0x64] ss:$8 sps:$4 sm:$0xff]  }
 0x223   :  { %v497_v0 = vld [vmem:[#allocation4 + $0x1] sm:$0xff] }
 0x224   :  { %491 = vst.msk [vmem:[#allocation4 + $0x19] sm:$0xff] %vm309_vm2, %v487_v61  ;;  %v488_v63 = vmax.f32 %v484_v62, 0.0  ;;  %v493_v32 = vld [vmem:[#allocation4] sm:$0xff] }
 0x225   :  { %v501_v3 = vld [vmem:[#allocation4 + $0x2] sm:$0xff]  ;;  %v502_v4 = vld [vmem:[#allocation4 + $0xa] sm:$0xff] }
 0x226   :  { %v498_v5 = vld [vmem:[#allocation4 + $0x9] sm:$0xff]  ;;  %492 = vst.msk [vmem:[#allocation4 + $0x21] sm:$0xff] %vm309_vm2, %v488_v63  ;;  %v526_v6 = vpack.c.bf16 %v502_v4, %v501_v3  ;;  %v3421_v63 = vld [vmem:[#allocation6 + $0x84] ss:$8 sps:$4 sm:$0xff]  }
 0x227   :  { %v3339_v7 = vpack.i.bf16 %v498_v5, %v497_v0  ;;  %v494_v2 = vld [vmem:[#allocation4 + $0x8] sm:$0xff]  ;;  %v3419_v0 = vld [vmem:[#allocation6 + $0x80] ss:$8 sps:$4 sm:$0xff]  }
 0x228   :  { %2968 = vmatprep.mubr.msk.bf16.mxu1 %vm309_vm2, %v526_v6  ;;  %v3415_v61 = vld [vmem:[#allocation6 + $0x74] ss:$8 sps:$4 sm:$0xff]   ;;  %v3413_v62 = vld [vmem:[#allocation6 + $0x70] ss:$8 sps:$4 sm:$0xff]   ;;  %v3433_v6 = vld [vmem:[#allocation6 + $0xa4] ss:$8 sps:$4 sm:$0xff]  }
 0x229   :  { %3340 = vrot.lane.b32.xlu0 %v3339_v7, %s3804_s26  ;;  %v3427_v3 = vld [vmem:[#allocation6 + $0x94] ss:$8 sps:$4 sm:$0xff]   ;;  %v3425_v4 = vld [vmem:[#allocation6 + $0x90] ss:$8 sps:$4 sm:$0xff]   ;;  %v3431_v7 = vld [vmem:[#allocation6 + $0xa0] ss:$8 sps:$4 sm:$0xff]  }
 0x22a   :  { %v3430_v5 = vld [vmem:[#allocation6 + $0x390] ss:$8 sps:$4 sm:$0xff]  }
 0x22b   :  { %v499_v14 = vld [vmem:[#allocation4 + $0x19] sm:$0xff]  ;;  %2532 = vmatpush1.bf16.msra.mxu0 %v3430_v5 }
 0x22c   :  { %v495_v48 = vld [vmem:[#allocation4 + $0x18] sm:$0xff]  ;;  %2533 = vmatprep.subr.bf16.mxu0 %v3434_v8 }
 0x22d   :  { %v500_v15 = vld [vmem:[#allocation4 + $0x21] sm:$0xff] }
 0x22e   :  { %v3344_v16 = vpack.i.bf16 %v500_v15, %v499_v14  ;;  %v503_v35 = vld [vmem:[#allocation4 + $0x1a] sm:$0xff]  ;;  %v504_v36 = vld [vmem:[#allocation4 + $0x22] sm:$0xff] }
 0x22f   :  { %v528_v42 = vpack.c.bf16 %v504_v36, %v503_v35  ;;  %v496_v49 = vld [vmem:[#allocation4 + $0x20] sm:$0xff]  ;;  %2534 = vmatpush1.bf16.msra.mxu0 %v3436_v9  ;;  %v3443_v15 = vld [vmem:[#allocation6 + $0xc0] ss:$8 sps:$4 sm:$0xff]  }
 0x230   :  { %3345 = vrot.lane.b32.xlu1 %v3344_v16, %s3804_s26  ;;  %2535 = vmatprep.subr.bf16.mxu0 %v3440_v12  ;;  %v3445_v14 = vld [vmem:[#allocation6 + $0xc4] ss:$8 sps:$4 sm:$0xff]  }
 0x231   :  { %v3446_v16 = vld [vmem:[#allocation6 + $0x3c4] ss:$8 sps:$4 sm:$0xff]  }
 0x233   :  { %2536 = vmatpush1.bf16.msra.mxu0 %v3442_v13 }
 0x234   :  { %2537 = vmatprep.subr.bf16.mxu0 %v3446_v16 }
 0x237   :  { %2538 = vmatpush1.bf16.msra.mxu0 %v3448_v17 }
 0x238   :  { %2539 = vmatprep.subr.bf16.mxu0 %v3452_v20 }
 0x23b   :  { %2540 = vmatpush1.bf16.msra.mxu0 %v3454_v21 }
 0x23c   :  { %2541 = vmatprep.subr.bf16.mxu0 %v3458_v24  ;;  %v3470_v24 = vld [vmem:[#allocation6 + $0x400] ss:$8 sps:$4 sm:$0xff]  }
 0x23f   :  { %2542 = vmatpush1.bf16.msra.mxu0 %v3460_v25 }
 0x240   :  { %2543 = vmatprep.subr.bf16.mxu0 %v3464_v28 }
 0x243   :  { %2544 = vmatpush1.bf16.msra.mxu0 %v3466_v29 }
 0x29b   :  { %v3341_v31 = vpop.permute.xlu0 %3340 }
 0x29c   :  { %v3343_v33 = vunpack.i.h.bf16 %v3341_v31  ;;  %v3342_v34 = vunpack.i.l.bf16 %v3341_v31  ;;  %v3472_v31 = vld [vmem:[#allocation6 + $0x404] ss:$8 sps:$4 sm:$0xff]  }
 0x29d   :  { %2554 = vmatprep.subr.bf16.mxu0 %v3472_v31  ;;  %v3476_v31 = vld [vmem:[#allocation6 + $0x410] ss:$8 sps:$4 sm:$0xff]  }
 0x29e   :  { %v521_v37 = vsel %vm309_vm2, %v493_v32, %v3342_v34  ;;  %v522_v38 = vsel %vm309_vm2, %v494_v2, %v3343_v33  ;;  %v2970_v34 = vld [vmem:[%s4206_s8] ss:$0 sm:$0xff] }
 0x29f   :  { %v525_v40 = vpack.c.bf16 %v522_v38, %v521_v37  ;;  %v3807_v37 = vmov 1966171168  }
 0x2a0   :  { %v713_v38 = vunpack.c.l.s4 %v3807_v37  ;;  %v3493_v37 = vld [vmem:[#allocation6 + $0x144] ss:$8 sps:$4 sm:$0xff]  }
 0x2a1   :  { %664 = vmatmul.mubr.bf16.vlgmr.msra.gmra.mrb[8].mxu1 %v525_v40  ;;  %v2971_v40 = vld [vmem:[%s4207_s9] ss:$0 sm:$0xff] }
 0x2a2   :  { %2969 = vmatprep.mubr.msk.bf16.mxu1 %vm309_vm2, %v528_v42  ;;  %2391 = vmatpush1.bf16.msra.mxu1 %v3371_v39  ;;  %v3346_v44 = vpop.permute.xlu1 %3345  ;;  %v715_v39 = vlaneseq }
 0x2a3   :  { %2392 = vmatprep.subr.bf16.mxu1 %v3379_v41  ;;  %v3348_v46 = vunpack.i.h.bf16 %v3346_v44  ;;  %v3347_v47 = vunpack.i.l.bf16 %v3346_v44 }
 0x2a5   :  { %v523_v50 = vsel %vm309_vm2, %v495_v48, %v3347_v47  ;;  %v524_v51 = vsel %vm309_vm2, %v496_v49, %v3348_v46  ;;  %v4091_v46 = vshrl.u32 %v715_v39, 7  ;;  %v3491_v39 = vld [vmem:[#allocation6 + $0x140] ss:$8 sps:$4 sm:$0xff]  }
 0x2a6   :  { %2393 = vmatpush1.bf16.msra.mxu1 %v3377_v43  ;;  %v527_v1 = vpack.c.bf16 %v524_v51, %v523_v50 }
 0x2a7   :  { %2394 = vmatprep.subr.bf16.mxu1 %v3385_v45  ;;  %v714_v45 = vunpack.c.0.s8 %v713_v38  ;;  %v3488_v38 = vld [vmem:[#allocation6 + $0x430] ss:$8 sps:$4 sm:$0xff]  }
 0x2a9   :  { %672 = vmatmul.mubr.bf16.gmra.mrb[12].mxu1 %v527_v1 }
 0x2aa   :  { %2395 = vmatpush1.bf16.msra.mxu1 %v3383_v52 }
 0x2ab   :  { %2396 = vmatprep.subr.bf16.mxu1 %v3391_v53 }
 0x2ae   :  { %2397 = vmatpush1.bf16.msra.mxu1 %v3389_v54  ;;  %v717_v54 = vsub.s32 %v714_v45, %v4091_v46  ;;  %v3505_v45 = vld [vmem:[#allocation6 + $0x164] ss:$8 sps:$4 sm:$0xff]  }
 0x2af   :  { %2398 = vmatprep.subr.bf16.mxu1 %v3397_v55 }
 0x2b2   :  { %2399 = vmatpush1.bf16.msra.mxu1 %v3395_v56 }
 0x2b3   :  { %2400 = vmatprep.subr.bf16.mxu1 %v3403_v57 }
 0x2b6   :  { %2401 = vmatpush1.bf16.msra.mxu1 %v3401_v58 }
 0x2b7   :  { %2402 = vmatprep.subr.bf16.mxu1 %v3409_v59 }
 0x2ba   :  { %2403 = vmatpush1.bf16.msra.mxu1 %v3407_v60 }
 0x2bb   :  { %2404 = vmatprep.subr.bf16.mxu1 %v3415_v61 }
 0x2be   :  { %2405 = vmatpush1.bf16.msra.mxu1 %v3413_v62 }
 0x2bf   :  { %2406 = vmatprep.subr.bf16.mxu1 %v3421_v63 }
 0x2c2   :  { %2407 = vmatpush1.bf16.msra.mxu1 %v3419_v0 }
 0x2c3   :  { %2408 = vmatprep.subr.bf16.mxu1 %v3427_v3 }
 0x2c6   :  { %2409 = vmatpush1.bf16.msra.mxu1 %v3425_v4 }
 0x2c7   :  { %2410 = vmatprep.subr.bf16.mxu1 %v3433_v6 }
 0x2ca   :  { %2411 = vmatpush1.bf16.msra.mxu1 %v3431_v7 }
 0x2cb   :  { %2412 = vmatprep.subr.bf16.mxu1 %v3439_v10 }
 0x2ce   :  { %2413 = vmatpush1.bf16.msra.mxu1 %v3437_v11 }
 0x2cf   :  { %2414 = vmatprep.subr.bf16.mxu1 %v3445_v14  ;;  %v3467_v14 = vld [vmem:[#allocation6 + $0x100] ss:$8 sps:$4 sm:$0xff]  }
 0x2d2   :  { %2415 = vmatpush1.bf16.msra.mxu1 %v3443_v15 }
 0x2d3   :  { %2416 = vmatprep.subr.bf16.mxu1 %v3451_v18 }
 0x2d6   :  { %2417 = vmatpush1.bf16.msra.mxu1 %v3449_v19  ;;  %v3475_v19 = vld [vmem:[#allocation6 + $0x114] ss:$8 sps:$4 sm:$0xff]  }
 0x2d7   :  { %2418 = vmatprep.subr.bf16.mxu1 %v3457_v22 }
 0x2da   :  { %2419 = vmatpush1.bf16.msra.mxu1 %v3455_v23 }
 0x2db   :  { %2420 = vmatprep.subr.bf16.mxu1 %v3463_v26  ;;  %v3473_v26 = vld [vmem:[#allocation6 + $0x110] ss:$8 sps:$4 sm:$0xff]  }
 0x2de   :  { %2421 = vmatpush1.bf16.msra.mxu1 %v3461_v27  ;;  %v3478_v27 = vld [vmem:[#allocation6 + $0x414] ss:$8 sps:$4 sm:$0xff]  }
 0x2df   :  { %2431 = vmatprep.subr.bf16.mxu1 %v3469_v30  ;;  %v3481_v30 = vld [vmem:[#allocation6 + $0x124] ss:$8 sps:$4 sm:$0xff]  }
 0x374   :  { %v665_v32 = vpop.f32.mrb[8].mxu1 }
 0x375   :  { %v667_v33 = vpop.f32.mrb[9].mxu1  ;;  %v687_v36 = vmul.f32 %v2970_v34, %v665_v32  ;;  %v3479_v32 = vld [vmem:[#allocation6 + $0x120] ss:$8 sps:$4 sm:$0xff]  }
 0x376   :  { %v668_v2 = vpop.f32.mrb[10].mxu1  ;;  %v3484_v33 = vld [vmem:[#allocation6 + $0x424] ss:$8 sps:$4 sm:$0xff]  }
 0x377   :  { %v670_v35 = vpop.f32.mrb[11].mxu1  ;;  %v688_v41 = vmul.f32 %v2970_v34, %v668_v2  ;;  %v698_v43 = vadd.f32 %v2971_v40, %v687_v36  ;;  %v3482_v2 = vld [vmem:[#allocation6 + $0x420] ss:$8 sps:$4 sm:$0xff]   ;;  %v3490_v36 = vld [vmem:[#allocation6 + $0x434] ss:$8 sps:$4 sm:$0xff]  }
 0x378   :  { %v3485_v35 = vld [vmem:[#allocation6 + $0x130] ss:$8 sps:$4 sm:$0xff]  }
 0x379   :  { %v699_v49 = vadd.f32 %v2971_v40, %v688_v41  ;;  %v702_v1 = vmax.f32 %v698_v43, 0.0  ;;  %v3499_v41 = vld [vmem:[#allocation6 + $0x154] ss:$8 sps:$4 sm:$0xff]   ;;  %v3497_v43 = vld [vmem:[#allocation6 + $0x150] ss:$8 sps:$4 sm:$0xff]  }
 0x37b   :  { %v703_v56 = vmax.f32 %v699_v49, 0.0  ;;  %v3508_v49 = vld [vmem:[#allocation6 + $0x464] ss:$8 sps:$4 sm:$0xff]  }
 0x37c   :  { %v673_v42 = vpop.f32.mrb[12].mxu1 }
 0x37d   :  { %v689_v44 = vmul.f32 %v2970_v34, %v673_v42  ;;  %v675_v47 = vpop.f32.mrb[13].mxu1  ;;  %v3494_v42 = vld [vmem:[#allocation6 + $0x440] ss:$8 sps:$4 sm:$0xff]  }
 0x37e   :  { %v676_v48 = vpop.f32.mrb[14].mxu1  ;;  %v3500_v47 = vld [vmem:[#allocation6 + $0x450] ss:$8 sps:$4 sm:$0xff]  }
 0x37f   :  { %v700_v50 = vadd.f32 %v2971_v40, %v689_v44  ;;  %v690_v51 = vmul.f32 %v2970_v34, %v676_v48  ;;  %v678_v52 = vpop.f32.mrb[15].mxu1  ;;  %v3487_v34 = vld [vmem:[#allocation6 + $0x134] ss:$8 sps:$4 sm:$0xff]   ;;  %v3503_v48 = vld [vmem:[#allocation6 + $0x160] ss:$8 sps:$4 sm:$0xff]  }
 0x380   :  { %v3502_v44 = vld [vmem:[#allocation6 + $0x454] ss:$8 sps:$4 sm:$0xff]   ;;  %v3509_v52 = vld [vmem:[#allocation6 + $0x170] ss:$8 sps:$4 sm:$0xff]  }
 0x381   :  { %v704_v53 = vmax.f32 %v700_v50, 0.0  ;;  %v701_v55 = vadd.f32 %v2971_v40, %v690_v51  ;;  %v3496_v40 = vld [vmem:[#allocation6 + $0x444] ss:$8 sps:$4 sm:$0xff]   ;;  %v3511_v50 = vld [vmem:[#allocation6 + $0x174] ss:$8 sps:$4 sm:$0xff]  }
 0x382   :  { %v3506_v51 = vld [vmem:[#allocation6 + $0x460] ss:$8 sps:$4 sm:$0xff]  }
 0x383   :  { %v710_v57 = vcombine.low %v702_v1, %v704_v53  ;;  %v711_v58 = vcombine.high %v702_v1, %v704_v53  ;;  %v705_v59 = vmax.f32 %v701_v55, 0.0  ;;  %v3514_v1 = vld [vmem:[#allocation6 + $0x474] ss:$8 sps:$4 sm:$0xff]   ;;  %v3517_v53 = vld [vmem:[#allocation6 + $0x184] ss:$8 sps:$4 sm:$0xff]  }
 0x384   :  { %v3515_v55 = vld [vmem:[#allocation6 + $0x180] ss:$8 sps:$4 sm:$0xff]  }
 0x385   :  { %v718_v60 = vrot.slane %v710_v57, %v717_v54  ;;  %v760_v61 = vcombine.low %v703_v56, %v705_v59  ;;  %v761_v62 = vcombine.high %v703_v56, %v705_v59  ;;  %v725_v63 = vrot.slane %v711_v58, %v717_v54  ;;  %v3520_v56 = vld [vmem:[#allocation6 + $0x484] ss:$8 sps:$4 sm:$0xff]   ;;  %v3523_v57 = vld [vmem:[#allocation6 + $0x194] ss:$8 sps:$4 sm:$0xff]   ;;  %v3518_v58 = vld [vmem:[#allocation6 + $0x480] ss:$8 sps:$4 sm:$0xff]  }
 0x386   :  { %v3521_v59 = vld [vmem:[#allocation6 + $0x190] ss:$8 sps:$4 sm:$0xff]  }
 0x387   :  { %v768_v0 = vrot.slane %v760_v61, %v717_v54  ;;  %v775_v3 = vrot.slane %v761_v62, %v717_v54  ;;  %v726_v4 = vcombine.high %v718_v60, %v718_v60  ;;  %v4094_v5 = vrot.slane %v718_v60, %v717_v54  ;;  %v3526_v60 = vld [vmem:[#allocation6 + $0x494] ss:$8 sps:$4 sm:$0xff]   ;;  %v3529_v61 = vld [vmem:[#allocation6 + $0x1a4] ss:$8 sps:$4 sm:$0xff]   ;;  %v3524_v62 = vld [vmem:[#allocation6 + $0x490] ss:$8 sps:$4 sm:$0xff]  }
 0x388   :  { %v727_v6 = vcombine.high %v725_v63, %v725_v63  ;;  %v4096_v7 = vrot.slane %v725_v63, %v717_v54  ;;  %v3527_v63 = vld [vmem:[#allocation6 + $0x1a0] ss:$8 sps:$4 sm:$0xff]  }
 0x389   :  { %v4098_v8 = vrot.slane %v768_v0, %v717_v54  ;;  %v4100_v9 = vrot.slane %v775_v3, %v717_v54  ;;  %v748_v10 = vrot.slane %v726_v4, %v717_v54  ;;  %v776_v12 = vcombine.high %v768_v0, %v768_v0  ;;  %v3532_v0 = vld [vmem:[#allocation6 + $0x4a4] ss:$8 sps:$4 sm:$0xff]   ;;  %v3530_v4 = vld [vmem:[#allocation6 + $0x4a0] ss:$8 sps:$4 sm:$0xff]  }
 0x38a   :  { %v4102_v11 = vrot.slane %v727_v6, %v717_v54  ;;  %v757_v16 = vcombine.high %v4096_v7, %v4096_v7  ;;  %v826_v17 = vpack.c.bf16 %v4094_v5, %v4094_v5  ;;  %v777_v22 = vcombine.high %v775_v3, %v775_v3  ;;  %v3535_v3 = vld [vmem:[#allocation6 + $0x1b4] ss:$8 sps:$4 sm:$0xff]   ;;  %v3533_v6 = vld [vmem:[#allocation6 + $0x1b0] ss:$8 sps:$4 sm:$0xff]  }
 0x38b   :  { %v827_v13 = vpack.c.bf16 %v748_v10, %v748_v10  ;;  %v758_v15 = vcombine.high %v748_v10, %v748_v10  ;;  %v4110_v20 = vrot.slane %v776_v12, %v717_v54  ;;  %v3538_v10 = vld [vmem:[#allocation6 + $0x4b4] ss:$8 sps:$4 sm:$0xff]   ;;  %v3541_v12 = vld [vmem:[#allocation6 + $0x1c4] ss:$8 sps:$4 sm:$0xff]  }
 0x38c   :  { %v759_v18 = vcombine.high %v4102_v11, %v4102_v11  ;;  %v832_v25 = vpack.c.bf16 %v757_v16, %v757_v16  ;;  %v4112_v28 = vrot.slane %v777_v22, %v717_v54  ;;  %v3512_v54 = vld [vmem:[#allocation6 + $0x470] ss:$8 sps:$4 sm:$0xff]   ;;  %v3547_v16 = vld [vmem:[#allocation6 + $0x1d4] ss:$8 sps:$4 sm:$0xff]  }
 0x38d   :  { %2422 = vmatprep.mubr.bf16.mxu1 %v827_v13  ;;  %v829_v21 = vpack.c.bf16 %v758_v15, %v758_v15  ;;  %v835_v29 = vpack.c.bf16 %v4110_v20, %v4110_v20  ;;  %v3536_v13 = vld [vmem:[#allocation6 + $0x4b0] ss:$8 sps:$4 sm:$0xff]   ;;  %v3544_v15 = vld [vmem:[#allocation6 + $0x4c4] ss:$8 sps:$4 sm:$0xff]  }
 0x38e   :  { %2423 = vmatmul.mubr.bf16.vlgmr.msra.gmra.mrb[16].mxu1 %v826_v17  ;;  %v833_v23 = vpack.c.bf16 %v759_v18, %v759_v18  ;;  %v3542_v17 = vld [vmem:[#allocation6 + $0x4c0] ss:$8 sps:$4 sm:$0xff]   ;;  %v3545_v18 = vld [vmem:[#allocation6 + $0x1d0] ss:$8 sps:$4 sm:$0xff]  }
 0x38f   :  { %2432 = vmatpush1.bf16.msra.mxu1 %v3467_v14  ;;  %2463 = vmatprep.mubr.bf16.mxu1 %v829_v21  ;;  %v3539_v14 = vld [vmem:[#allocation6 + $0x1c0] ss:$8 sps:$4 sm:$0xff]   ;;  %v3553_v21 = vld [vmem:[#allocation6 + $0x1e4] ss:$8 sps:$4 sm:$0xff]   ;;  %v3548_v22 = vld [vmem:[#allocation6 + $0x4d0] ss:$8 sps:$4 sm:$0xff]  }
 0x390   :  { %2545 = vmatprep.mubr.bf16.mxu0 %v833_v23  ;;  %2433 = vmatprep.subr.bf16.mxu1 %v3475_v19  ;;  %v3550_v19 = vld [vmem:[#allocation6 + $0x4d4] ss:$8 sps:$4 sm:$0xff]   ;;  %v3551_v23 = vld [vmem:[#allocation6 + $0x1e0] ss:$8 sps:$4 sm:$0xff]  }
 0x391   :  { %2546 = vmatmul.mubr.bf16.vlgmr.msra.gmra.mrb[0].mxu0 %v832_v25  ;;  %v3559_v25 = vld [vmem:[#allocation6 + $0x1f4] ss:$8 sps:$4 sm:$0xff]  }
 0x392   :  { %2555 = vmatpush1.bf16.msra.mxu0 %v3470_v24  ;;  %2586 = vmatprep.mubr.bf16.mxu0 %v835_v29  ;;  %v3556_v24 = vld [vmem:[#allocation6 + $0x4e4] ss:$8 sps:$4 sm:$0xff]   ;;  %v3562_v29 = vld [vmem:[#allocation6 + $0x4f4] ss:$8 sps:$4 sm:$0xff]  }
 0x393   :  { %2434 = vmatpush1.bf16.msra.mxu1 %v3473_v26  ;;  %2556 = vmatprep.subr.bf16.mxu0 %v3478_v27  ;;  %v3554_v26 = vld [vmem:[#allocation6 + $0x4e0] ss:$8 sps:$4 sm:$0xff]   ;;  %v3557_v27 = vld [vmem:[#allocation6 + $0x1f0] ss:$8 sps:$4 sm:$0xff]  }
 0x394   :  { %2435 = vmatprep.subr.bf16.mxu1 %v3481_v30  ;;  %v756_v30 = vcombine.high %v4094_v5, %v4094_v5  ;;  %v834_v5 = vpack.c.bf16 %v4098_v8, %v4098_v8 }
 0x396   :  { %2557 = vmatpush1.bf16.msra.mxu0 %v3476_v31  ;;  %v3565_v31 = vld [vmem:[#allocation6 + $0x204] ss:$8 sps:$4 sm:$0xff]  }
 0x397   :  { %2436 = vmatpush1.bf16.msra.mxu1 %v3479_v32  ;;  %2558 = vmatprep.subr.bf16.mxu0 %v3484_v33  ;;  %v3560_v32 = vld [vmem:[#allocation6 + $0x4f0] ss:$8 sps:$4 sm:$0xff]   ;;  %v3563_v33 = vld [vmem:[#allocation6 + $0x200] ss:$8 sps:$4 sm:$0xff]  }
 0x398   :  { %2437 = vmatprep.subr.bf16.mxu1 %v3487_v34  ;;  %v828_v34 = vpack.c.bf16 %v756_v30, %v756_v30  ;;  %v3638_v30 = vld [vmem:[#allocation6 + $0x5c0] ss:$8 sps:$4 sm:$0xff]  }
 0x39a   :  { %2559 = vmatpush1.bf16.msra.mxu0 %v3482_v2  ;;  %v3568_v2 = vld [vmem:[#allocation6 + $0x504] ss:$8 sps:$4 sm:$0xff]  }
 0x39b   :  { %2438 = vmatpush1.bf16.msra.mxu1 %v3485_v35  ;;  %2560 = vmatprep.subr.bf16.mxu0 %v3490_v36  ;;  %v808_v35 = vcombine.high %v4110_v20, %v4110_v20  ;;  %v3571_v36 = vld [vmem:[#allocation6 + $0x214] ss:$8 sps:$4 sm:$0xff]   ;;  %v3572_v20 = vld [vmem:[#allocation6 + $0x510] ss:$8 sps:$4 sm:$0xff]  }
 0x39c   :  { %2439 = vmatprep.subr.bf16.mxu1 %v3493_v37  ;;  %v831_v37 = vpack.c.bf16 %v4102_v11, %v4102_v11  ;;  %v3575_v11 = vld [vmem:[#allocation6 + $0x220] ss:$8 sps:$4 sm:$0xff]  }
 0x39e   :  { %2561 = vmatpush1.bf16.msra.mxu0 %v3488_v38  ;;  %v3566_v38 = vld [vmem:[#allocation6 + $0x500] ss:$8 sps:$4 sm:$0xff]  }
 0x39f   :  { %2440 = vmatpush1.bf16.msra.mxu1 %v3491_v39  ;;  %2562 = vmatprep.subr.bf16.mxu0 %v3496_v40  ;;  %v3569_v39 = vld [vmem:[#allocation6 + $0x210] ss:$8 sps:$4 sm:$0xff]   ;;  %v3574_v40 = vld [vmem:[#allocation6 + $0x514] ss:$8 sps:$4 sm:$0xff]  }
 0x3a0   :  { %2441 = vmatprep.subr.bf16.mxu1 %v3499_v41  ;;  %v837_v41 = vpack.c.bf16 %v808_v35, %v808_v35  ;;  %v3652_v35 = vld [vmem:[#allocation6 + $0x5e4] ss:$8 sps:$4 sm:$0xff]  }
 0x3a2   :  { %2563 = vmatpush1.bf16.msra.mxu0 %v3494_v42  ;;  %v3577_v42 = vld [vmem:[#allocation6 + $0x224] ss:$8 sps:$4 sm:$0xff]  }
 0x3a3   :  { %2442 = vmatpush1.bf16.msra.mxu1 %v3497_v43  ;;  %2564 = vmatprep.subr.bf16.mxu0 %v3502_v44  ;;  %v3580_v43 = vld [vmem:[#allocation6 + $0x524] ss:$8 sps:$4 sm:$0xff]   ;;  %v3583_v44 = vld [vmem:[#allocation6 + $0x234] ss:$8 sps:$4 sm:$0xff]  }
 0x3a4   :  { %2443 = vmatprep.subr.bf16.mxu1 %v3505_v45  ;;  %v3578_v45 = vld [vmem:[#allocation6 + $0x520] ss:$8 sps:$4 sm:$0xff]  }
 0x3a6   :  { %2565 = vmatpush1.bf16.msra.mxu0 %v3500_v47  ;;  %v3581_v47 = vld [vmem:[#allocation6 + $0x230] ss:$8 sps:$4 sm:$0xff]  }
 0x3a7   :  { %2444 = vmatpush1.bf16.msra.mxu1 %v3503_v48  ;;  %2566 = vmatprep.subr.bf16.mxu0 %v3508_v49  ;;  %v3586_v48 = vld [vmem:[#allocation6 + $0x534] ss:$8 sps:$4 sm:$0xff]   ;;  %v3589_v49 = vld [vmem:[#allocation6 + $0x244] ss:$8 sps:$4 sm:$0xff]  }
 0x3a8   :  { %2445 = vmatprep.subr.bf16.mxu1 %v3511_v50  ;;  %v3584_v50 = vld [vmem:[#allocation6 + $0x530] ss:$8 sps:$4 sm:$0xff]  }
 0x3aa   :  { %2567 = vmatpush1.bf16.msra.mxu0 %v3506_v51  ;;  %v3587_v51 = vld [vmem:[#allocation6 + $0x240] ss:$8 sps:$4 sm:$0xff]  }
 0x3ab   :  { %2446 = vmatpush1.bf16.msra.mxu1 %v3509_v52  ;;  %2568 = vmatprep.subr.bf16.mxu0 %v3514_v1  ;;  %v3592_v52 = vld [vmem:[#allocation6 + $0x544] ss:$8 sps:$4 sm:$0xff]   ;;  %v3595_v1 = vld [vmem:[#allocation6 + $0x254] ss:$8 sps:$4 sm:$0xff]  }
 0x3ac   :  { %2447 = vmatprep.subr.bf16.mxu1 %v3517_v53  ;;  %v3590_v53 = vld [vmem:[#allocation6 + $0x540] ss:$8 sps:$4 sm:$0xff]  }
 0x3ae   :  { %2569 = vmatpush1.bf16.msra.mxu0 %v3512_v54  ;;  %v3593_v54 = vld [vmem:[#allocation6 + $0x250] ss:$8 sps:$4 sm:$0xff]  }
 0x3af   :  { %2448 = vmatpush1.bf16.msra.mxu1 %v3515_v55  ;;  %2570 = vmatprep.subr.bf16.mxu0 %v3520_v56  ;;  %v3598_v55 = vld [vmem:[#allocation6 + $0x554] ss:$8 sps:$4 sm:$0xff]   ;;  %v3601_v56 = vld [vmem:[#allocation6 + $0x264] ss:$8 sps:$4 sm:$0xff]  }
 0x3b0   :  { %2449 = vmatprep.subr.bf16.mxu1 %v3523_v57  ;;  %v3596_v57 = vld [vmem:[#allocation6 + $0x550] ss:$8 sps:$4 sm:$0xff]  }
 0x3b2   :  { %2571 = vmatpush1.bf16.msra.mxu0 %v3518_v58  ;;  %v3599_v58 = vld [vmem:[#allocation6 + $0x260] ss:$8 sps:$4 sm:$0xff]  }
 0x3b3   :  { %2450 = vmatpush1.bf16.msra.mxu1 %v3521_v59  ;;  %2572 = vmatprep.subr.bf16.mxu0 %v3526_v60  ;;  %v3604_v59 = vld [vmem:[#allocation6 + $0x564] ss:$8 sps:$4 sm:$0xff]   ;;  %v3607_v60 = vld [vmem:[#allocation6 + $0x274] ss:$8 sps:$4 sm:$0xff]  }
 0x3b4   :  { %2451 = vmatprep.subr.bf16.mxu1 %v3529_v61  ;;  %v3602_v61 = vld [vmem:[#allocation6 + $0x560] ss:$8 sps:$4 sm:$0xff]  }
 0x3b6   :  { %2573 = vmatpush1.bf16.msra.mxu0 %v3524_v62  ;;  %v3605_v62 = vld [vmem:[#allocation6 + $0x270] ss:$8 sps:$4 sm:$0xff]  }
 0x3b7   :  { %2452 = vmatpush1.bf16.msra.mxu1 %v3527_v63  ;;  %2574 = vmatprep.subr.bf16.mxu0 %v3532_v0  ;;  %v3610_v63 = vld [vmem:[#allocation6 + $0x574] ss:$8 sps:$4 sm:$0xff]   ;;  %v3613_v0 = vld [vmem:[#allocation6 + $0x284] ss:$8 sps:$4 sm:$0xff]  }
 0x3b8   :  { %2453 = vmatprep.subr.bf16.mxu1 %v3535_v3  ;;  %v3608_v3 = vld [vmem:[#allocation6 + $0x570] ss:$8 sps:$4 sm:$0xff]  }
 0x3ba   :  { %2575 = vmatpush1.bf16.msra.mxu0 %v3530_v4  ;;  %v3611_v4 = vld [vmem:[#allocation6 + $0x280] ss:$8 sps:$4 sm:$0xff]  }
 0x3bb   :  { %2454 = vmatpush1.bf16.msra.mxu1 %v3533_v6  ;;  %2576 = vmatprep.subr.bf16.mxu0 %v3538_v10  ;;  %v3616_v6 = vld [vmem:[#allocation6 + $0x584] ss:$8 sps:$4 sm:$0xff]   ;;  %v3619_v10 = vld [vmem:[#allocation6 + $0x294] ss:$8 sps:$4 sm:$0xff]  }
 0x3bc   :  { %2455 = vmatprep.subr.bf16.mxu1 %v3541_v12  ;;  %v3614_v12 = vld [vmem:[#allocation6 + $0x580] ss:$8 sps:$4 sm:$0xff]  }
 0x3be   :  { %2577 = vmatpush1.bf16.msra.mxu0 %v3536_v13  ;;  %v3617_v13 = vld [vmem:[#allocation6 + $0x290] ss:$8 sps:$4 sm:$0xff]  }
 0x3bf   :  { %2456 = vmatpush1.bf16.msra.mxu1 %v3539_v14  ;;  %2578 = vmatprep.subr.bf16.mxu0 %v3544_v15  ;;  %v3622_v14 = vld [vmem:[#allocation6 + $0x594] ss:$8 sps:$4 sm:$0xff]   ;;  %v3625_v15 = vld [vmem:[#allocation6 + $0x2a4] ss:$8 sps:$4 sm:$0xff]  }
 0x3c0   :  { %2457 = vmatprep.subr.bf16.mxu1 %v3547_v16  ;;  %v3620_v16 = vld [vmem:[#allocation6 + $0x590] ss:$8 sps:$4 sm:$0xff]  }
 0x3c2   :  { %2579 = vmatpush1.bf16.msra.mxu0 %v3542_v17  ;;  %v3623_v17 = vld [vmem:[#allocation6 + $0x2a0] ss:$8 sps:$4 sm:$0xff]  }
 0x3c3   :  { %2458 = vmatpush1.bf16.msra.mxu1 %v3545_v18  ;;  %2580 = vmatprep.subr.bf16.mxu0 %v3550_v19  ;;  %v3628_v18 = vld [vmem:[#allocation6 + $0x5a4] ss:$8 sps:$4 sm:$0xff]   ;;  %v3631_v19 = vld [vmem:[#allocation6 + $0x2b4] ss:$8 sps:$4 sm:$0xff]  }
 0x3c4   :  { %2459 = vmatprep.subr.bf16.mxu1 %v3553_v21  ;;  %v3626_v21 = vld [vmem:[#allocation6 + $0x5a0] ss:$8 sps:$4 sm:$0xff]  }
 0x3c6   :  { %2581 = vmatpush1.bf16.msra.mxu0 %v3548_v22  ;;  %v3629_v22 = vld [vmem:[#allocation6 + $0x2b0] ss:$8 sps:$4 sm:$0xff]  }
 0x3c7   :  { %2460 = vmatpush1.bf16.msra.mxu1 %v3551_v23  ;;  %2582 = vmatprep.subr.bf16.mxu0 %v3556_v24  ;;  %v3634_v23 = vld [vmem:[#allocation6 + $0x5b4] ss:$8 sps:$4 sm:$0xff]   ;;  %v3637_v24 = vld [vmem:[#allocation6 + $0x2c4] ss:$8 sps:$4 sm:$0xff]  }
 0x3c8   :  { %2461 = vmatprep.subr.bf16.mxu1 %v3559_v25  ;;  %v3632_v25 = vld [vmem:[#allocation6 + $0x5b0] ss:$8 sps:$4 sm:$0xff]  }
 0x3ca   :  { %2583 = vmatpush1.bf16.msra.mxu0 %v3554_v26  ;;  %v3635_v26 = vld [vmem:[#allocation6 + $0x2c0] ss:$8 sps:$4 sm:$0xff]  }
 0x3cb   :  { %2462 = vmatpush1.bf16.msra.mxu1 %v3557_v27  ;;  %2584 = vmatprep.subr.bf16.mxu0 %v3562_v29  ;;  %v3640_v27 = vld [vmem:[#allocation6 + $0x5c4] ss:$8 sps:$4 sm:$0xff]   ;;  %v3643_v29 = vld [vmem:[#allocation6 + $0x2d4] ss:$8 sps:$4 sm:$0xff]  }
 0x3cc   :  { %2472 = vmatprep.subr.bf16.mxu1 %v3565_v31  ;;  %v3641_v31 = vld [vmem:[#allocation6 + $0x2d0] ss:$8 sps:$4 sm:$0xff]  }
 0x3ce   :  { %2585 = vmatpush1.bf16.msra.mxu0 %v3560_v32  ;;  %2464 = vmatmul.mubr.bf16.vlgmr.msra.gmra.mrb[16].mxu1 %v828_v34  ;;  %v3646_v32 = vld [vmem:[#allocation6 + $0x5d4] ss:$8 sps:$4 sm:$0xff]   ;;  %v3644_v34 = vld [vmem:[#allocation6 + $0x5d0] ss:$8 sps:$4 sm:$0xff]  }
 0x3cf   :  { %2473 = vmatpush1.bf16.msra.mxu1 %v3563_v33  ;;  %2504 = vmatprep.mubr.bf16.mxu1 %v831_v37  ;;  %v3649_v33 = vld [vmem:[#allocation6 + $0x2e4] ss:$8 sps:$4 sm:$0xff]   ;;  %v3650_v37 = vld [vmem:[#allocation6 + $0x5e0] ss:$8 sps:$4 sm:$0xff]  }
 0x3d0   :  { %2595 = vmatprep.subr.bf16.mxu0 %v3568_v2  ;;  %2474 = vmatprep.subr.bf16.mxu1 %v3571_v36  ;;  %v3647_v2 = vld [vmem:[#allocation6 + $0x2e0] ss:$8 sps:$4 sm:$0xff]   ;;  %v3655_v36 = vld [vmem:[#allocation6 + $0x2f4] ss:$8 sps:$4 sm:$0xff]  }
 0x3d1   :  { %2587 = vmatmul.mubr.bf16.vlgmr.msra.gmra.mrb[0].mxu0 %v834_v5  ;;  %v3658_v5 = vld [vmem:[#allocation6 + $0x5f4] ss:$8 sps:$4 sm:$0xff]  }
 0x3d2   :  { %2596 = vmatpush1.bf16.msra.mxu0 %v3566_v38  ;;  %2627 = vmatprep.mubr.bf16.mxu0 %v837_v41  ;;  %v3653_v38 = vld [vmem:[#allocation6 + $0x2f0] ss:$8 sps:$4 sm:$0xff]   ;;  %v3661_v41 = vld [vmem:[#allocation6 + $0x604] ss:$8 sps:$4 sm:$0xff]  }
 0x3d3   :  { %2475 = vmatpush1.bf16.msra.mxu1 %v3569_v39  ;;  %2597 = vmatprep.subr.bf16.mxu0 %v3574_v40  ;;  %v3656_v39 = vld [vmem:[#allocation6 + $0x5f0] ss:$8 sps:$4 sm:$0xff]   ;;  %v806_v40 = vcombine.high %v4098_v8, %v4098_v8  ;;  %v3665_v8 = vld [vmem:[#allocation6 + $0x620] ss:$8 sps:$4 sm:$0xff]  }
 0x3d4   :  { %2476 = vmatprep.subr.bf16.mxu1 %v3577_v42  ;;  %v830_v42 = vpack.c.bf16 %v4096_v7, %v4096_v7  ;;  %v3668_v7 = vld [vmem:[#allocation6 + $0x630] ss:$8 sps:$4 sm:$0xff]  }
 0x3d6   :  { %2598 = vmatpush1.bf16.msra.mxu0 %v3572_v20  ;;  %v3659_v20 = vld [vmem:[#allocation6 + $0x600] ss:$8 sps:$4 sm:$0xff]  }
 0x3d7   :  { %2477 = vmatpush1.bf16.msra.mxu1 %v3575_v11  ;;  %2599 = vmatprep.subr.bf16.mxu0 %v3580_v43  ;;  %v836_v11 = vpack.c.bf16 %v806_v40, %v806_v40  ;;  %v3664_v43 = vld [vmem:[#allocation6 + $0x614] ss:$8 sps:$4 sm:$0xff]   ;;  %v3761_v40 = vld [vmem:[%s4210_s12 + $0x58] sm:$0xff]  }
 0x3d8   :  { %2478 = vmatprep.subr.bf16.mxu1 %v3583_v44  ;;  %v839_v44 = vpack.c.bf16 %v4112_v28, %v4112_v28 }
 0x3da   :  { %2600 = vmatpush1.bf16.msra.mxu0 %v3578_v45  ;;  %v3662_v45 = vld [vmem:[#allocation6 + $0x610] ss:$8 sps:$4 sm:$0xff]  }
 0x3db   :  { %2479 = vmatpush1.bf16.msra.mxu1 %v3581_v47  ;;  %2601 = vmatprep.subr.bf16.mxu0 %v3586_v48  ;;  %v3667_v47 = vld [vmem:[#allocation6 + $0x624] ss:$8 sps:$4 sm:$0xff]   ;;  %v3670_v48 = vld [vmem:[#allocation6 + $0x634] ss:$8 sps:$4 sm:$0xff]  }
 0x3dc   :  { %2480 = vmatprep.subr.bf16.mxu1 %v3589_v49  ;;  %v3673_v49 = vld [vmem:[#allocation6 + $0x644] ss:$8 sps:$4 sm:$0xff]  }
 0x3de   :  { %2602 = vmatpush1.bf16.msra.mxu0 %v3584_v50  ;;  %v3671_v50 = vld [vmem:[#allocation6 + $0x640] ss:$8 sps:$4 sm:$0xff]  }
 0x3df   :  { %2481 = vmatpush1.bf16.msra.mxu1 %v3587_v51  ;;  %2603 = vmatprep.subr.bf16.mxu0 %v3592_v52  ;;  %v3676_v51 = vld [vmem:[#allocation6 + $0x654] ss:$8 sps:$4 sm:$0xff]   ;;  %v3674_v52 = vld [vmem:[#allocation6 + $0x650] ss:$8 sps:$4 sm:$0xff]  }
 0x3e0   :  { %2482 = vmatprep.subr.bf16.mxu1 %v3595_v1  ;;  %v3679_v1 = vld [vmem:[#allocation6 + $0x664] ss:$8 sps:$4 sm:$0xff]  }
 0x3e2   :  { %2604 = vmatpush1.bf16.msra.mxu0 %v3590_v53  ;;  %v3677_v53 = vld [vmem:[#allocation6 + $0x660] ss:$8 sps:$4 sm:$0xff]  }
 0x3e3   :  { %2483 = vmatpush1.bf16.msra.mxu1 %v3593_v54  ;;  %2605 = vmatprep.subr.bf16.mxu0 %v3598_v55  ;;  %v3682_v54 = vld [vmem:[#allocation6 + $0x674] ss:$8 sps:$4 sm:$0xff]   ;;  %v3680_v55 = vld [vmem:[#allocation6 + $0x670] ss:$8 sps:$4 sm:$0xff]  }
 0x3e4   :  { %2484 = vmatprep.subr.bf16.mxu1 %v3601_v56  ;;  %v3685_v56 = vld [vmem:[#allocation6 + $0x684] ss:$8 sps:$4 sm:$0xff]  }
 0x3e6   :  { %2606 = vmatpush1.bf16.msra.mxu0 %v3596_v57  ;;  %v3683_v57 = vld [vmem:[#allocation6 + $0x680] ss:$8 sps:$4 sm:$0xff]  }
 0x3e7   :  { %2485 = vmatpush1.bf16.msra.mxu1 %v3599_v58  ;;  %2607 = vmatprep.subr.bf16.mxu0 %v3604_v59  ;;  %v3688_v58 = vld [vmem:[#allocation6 + $0x694] ss:$8 sps:$4 sm:$0xff]   ;;  %v3686_v59 = vld [vmem:[#allocation6 + $0x690] ss:$8 sps:$4 sm:$0xff]  }
 0x3e8   :  { %2486 = vmatprep.subr.bf16.mxu1 %v3607_v60  ;;  %v3691_v60 = vld [vmem:[#allocation6 + $0x6a4] ss:$8 sps:$4 sm:$0xff]  }
 0x3ea   :  { %2608 = vmatpush1.bf16.msra.mxu0 %v3602_v61  ;;  %v3689_v61 = vld [vmem:[#allocation6 + $0x6a0] ss:$8 sps:$4 sm:$0xff]  }
 0x3eb   :  { %2487 = vmatpush1.bf16.msra.mxu1 %v3605_v62  ;;  %2609 = vmatprep.subr.bf16.mxu0 %v3610_v63  ;;  %v3694_v62 = vld [vmem:[#allocation6 + $0x6b4] ss:$8 sps:$4 sm:$0xff]   ;;  %v3692_v63 = vld [vmem:[#allocation6 + $0x6b0] ss:$8 sps:$4 sm:$0xff]  }
 0x3ec   :  { %2488 = vmatprep.subr.bf16.mxu1 %v3613_v0  ;;  %v3697_v0 = vld [vmem:[#allocation6 + $0x6c4] ss:$8 sps:$4 sm:$0xff]  }
 0x3ee   :  { %2610 = vmatpush1.bf16.msra.mxu0 %v3608_v3  ;;  %v3695_v3 = vld [vmem:[#allocation6 + $0x6c0] ss:$8 sps:$4 sm:$0xff]  }
 0x3ef   :  { %2489 = vmatpush1.bf16.msra.mxu1 %v3611_v4  ;;  %2611 = vmatprep.subr.bf16.mxu0 %v3616_v6  ;;  %v3700_v4 = vld [vmem:[#allocation6 + $0x6d4] ss:$8 sps:$4 sm:$0xff]   ;;  %v3698_v6 = vld [vmem:[#allocation6 + $0x6d0] ss:$8 sps:$4 sm:$0xff]  }
 0x3f0   :  { %2490 = vmatprep.subr.bf16.mxu1 %v3619_v10  ;;  %v3703_v10 = vld [vmem:[#allocation6 + $0x6e4] ss:$8 sps:$4 sm:$0xff]  }
 0x3f2   :  { %2612 = vmatpush1.bf16.msra.mxu0 %v3614_v12  ;;  %v3701_v12 = vld [vmem:[#allocation6 + $0x6e0] ss:$8 sps:$4 sm:$0xff]  }
 0x3f3   :  { %2491 = vmatpush1.bf16.msra.mxu1 %v3617_v13  ;;  %2613 = vmatprep.subr.bf16.mxu0 %v3622_v14  ;;  %v3706_v13 = vld [vmem:[#allocation6 + $0x6f4] ss:$8 sps:$4 sm:$0xff]   ;;  %v3704_v14 = vld [vmem:[#allocation6 + $0x6f0] ss:$8 sps:$4 sm:$0xff]  }
 0x3f4   :  { %2492 = vmatprep.subr.bf16.mxu1 %v3625_v15  ;;  %v3709_v15 = vld [vmem:[#allocation6 + $0x704] ss:$8 sps:$4 sm:$0xff]  }
 0x3f6   :  { %2614 = vmatpush1.bf16.msra.mxu0 %v3620_v16  ;;  %v809_v16 = vcombine.high %v4112_v28, %v4112_v28  ;;  %v3716_v28 = vld [vmem:[#allocation6 + $0x730] ss:$8 sps:$4 sm:$0xff]  }
 0x3f7   :  { %2493 = vmatpush1.bf16.msra.mxu1 %v3623_v17  ;;  %2615 = vmatprep.subr.bf16.mxu0 %v3628_v18  ;;  %v3707_v17 = vld [vmem:[#allocation6 + $0x700] ss:$8 sps:$4 sm:$0xff]   ;;  %v838_v18 = vpack.c.bf16 %v4100_v9, %v4100_v9 }
 0x3f8   :  { %2494 = vmatprep.subr.bf16.mxu1 %v3631_v19  ;;  %v3712_v19 = vld [vmem:[#allocation6 + $0x714] ss:$8 sps:$4 sm:$0xff]  }
 0x3fa   :  { %2616 = vmatpush1.bf16.msra.mxu0 %v3626_v21  ;;  %v841_v21 = vpack.c.bf16 %v809_v16, %v809_v16 }
 0x3fb   :  { %2495 = vmatpush1.bf16.msra.mxu1 %v3629_v22  ;;  %2617 = vmatprep.subr.bf16.mxu0 %v3634_v23  ;;  %v3710_v22 = vld [vmem:[#allocation6 + $0x710] ss:$8 sps:$4 sm:$0xff]   ;;  %v3715_v23 = vld [vmem:[#allocation6 + $0x724] ss:$8 sps:$4 sm:$0xff]  }
 0x3fc   :  { %2496 = vmatprep.subr.bf16.mxu1 %v3637_v24  ;;  %v3713_v24 = vld [vmem:[#allocation6 + $0x720] ss:$8 sps:$4 sm:$0xff]  }
 0x3fe   :  { %2618 = vmatpush1.bf16.msra.mxu0 %v3632_v25  ;;  %v3718_v25 = vld [vmem:[#allocation6 + $0x734] ss:$8 sps:$4 sm:$0xff]  }
 0x3ff   :  { %2497 = vmatpush1.bf16.msra.mxu1 %v3635_v26  ;;  %2619 = vmatprep.subr.bf16.mxu0 %v3640_v27  ;;  %v3721_v26 = vld [vmem:[#allocation6 + $0x744] ss:$8 sps:$4 sm:$0xff]   ;;  %v3719_v27 = vld [vmem:[#allocation6 + $0x740] ss:$8 sps:$4 sm:$0xff]  }
 0x400   :  { %2498 = vmatprep.subr.bf16.mxu1 %v3643_v29  ;;  %v3724_v29 = vld [vmem:[#allocation6 + $0x754] ss:$8 sps:$4 sm:$0xff]  }
 0x402   :  { %2620 = vmatpush1.bf16.msra.mxu0 %v3638_v30  ;;  %v3722_v30 = vld [vmem:[#allocation6 + $0x750] ss:$8 sps:$4 sm:$0xff]  }
 0x403   :  { %2499 = vmatpush1.bf16.msra.mxu1 %v3641_v31  ;;  %2621 = vmatprep.subr.bf16.mxu0 %v3646_v32  ;;  %v3727_v31 = vld [vmem:[#allocation6 + $0x764] ss:$8 sps:$4 sm:$0xff]  }
 0x404   :  { %2500 = vmatprep.subr.bf16.mxu1 %v3649_v33  ;;  %v3755_v32 = vld [vmem:[%s4210_s12 + $0x40] sm:$0xff]  }
 0x405   :  { %v3756_v33 = vld [vmem:[%s4210_s12] sm:$0xff]  }
 0x406   :  { %2622 = vmatpush1.bf16.msra.mxu0 %v3644_v34  ;;  %v3757_v34 = vld [vmem:[%s4210_s12 + $0x48] sm:$0xff]  }
 0x407   :  { %2501 = vmatpush1.bf16.msra.mxu1 %v3647_v2  ;;  %2623 = vmatprep.subr.bf16.mxu0 %v3652_v35  ;;  %v3725_v2 = vld [vmem:[#allocation6 + $0x760] ss:$8 sps:$4 sm:$0xff]   ;;  %v3730_v35 = vld [vmem:[#allocation6 + $0x774] ss:$8 sps:$4 sm:$0xff]  }
 0x408   :  { %2502 = vmatprep.subr.bf16.mxu1 %v3655_v36  ;;  %v3758_v36 = vld [vmem:[%s4210_s12 + $0x8] sm:$0xff]  }
 0x40a   :  { %2624 = vmatpush1.bf16.msra.mxu0 %v3650_v37  ;;  %v3759_v37 = vld [vmem:[%s4210_s12 + $0x50] sm:$0xff]  }
 0x40b   :  { %2503 = vmatpush1.bf16.msra.mxu1 %v3653_v38  ;;  %2625 = vmatprep.subr.bf16.mxu0 %v3658_v5  ;;  %v3728_v38 = vld [vmem:[#allocation6 + $0x770] ss:$8 sps:$4 sm:$0xff]   ;;  %v3733_v5 = vld [vmem:[#allocation6 + $0x784] ss:$8 sps:$4 sm:$0xff]  }
 0x40c   :  { %3248 = vmatprep.subr.bf16.mxu1 %v3755_v32 }
 0x40e   :  { %2626 = vmatpush1.bf16.msra.mxu0 %v3656_v39  ;;  %2505 = vmatmul.mubr.bf16.vlgmr.msra.gmra.mrb[16].mxu1 %v830_v42  ;;  %v3760_v39 = vld [vmem:[%s4210_s12 + $0x10] sm:$0xff]  }
 0x40f   :  { %2636 = vmatprep.subr.bf16.mxu0 %v3661_v41  ;;  %3249 = vmatpush3.bf16.msra.mxu1 %v3756_v33  ;;  %v3731_v41 = vld [vmem:[#allocation6 + $0x780] ss:$8 sps:$4 sm:$0xff]   ;;  %v3736_v42 = vld [vmem:[#allocation6 + $0x794] ss:$8 sps:$4 sm:$0xff]   ;;  %v3245_v33 = vld [vmem:[%s4212_s14] ss:$0 sm:$0xff] }
 0x410   :  { %3250 = vmatprep.subr.bf16.mxu1 %v3757_v34 }
 0x411   :  { %2628 = vmatmul.mubr.bf16.vlgmr.msra.gmra.mrb[0].mxu0 %v836_v11  ;;  %v3763_v11 = vld [vmem:[%s4210_s12 + $0x60] sm:$0xff]  }
 0x412   :  { %2637 = vmatpush1.bf16.msra.mxu0 %v3659_v20  ;;  %2668 = vmatprep.mubr.bf16.mxu0 %v839_v44  ;;  %v3762_v20 = vld [vmem:[%s4210_s12 + $0x18] sm:$0xff]  }
 0x413   :  { %2638 = vmatprep.subr.bf16.mxu0 %v3664_v43  ;;  %3251 = vmatpush3.bf16.msra.mxu1 %v3758_v36  ;;  %v3734_v43 = vld [vmem:[#allocation6 + $0x790] ss:$8 sps:$4 sm:$0xff]   ;;  %v3739_v44 = vld [vmem:[#allocation6 + $0x7a4] ss:$8 sps:$4 sm:$0xff]   ;;  %v3246_v36 = vld [vmem:[#allocation5] ss:$0 sm:$0xff] }
 0x414   :  { %3252 = vmatprep.subr.bf16.mxu1 %v3759_v37 }
 0x416   :  { %2639 = vmatpush1.bf16.msra.mxu0 %v3662_v45  ;;  %v3764_v45 = vld [vmem:[%s4210_s12 + $0x20] sm:$0xff]  }
 0x417   :  { %2640 = vmatprep.subr.bf16.mxu0 %v3667_v47  ;;  %3253 = vmatpush3.bf16.msra.mxu1 %v3760_v39  ;;  %v3765_v47 = vld [vmem:[%s4210_s12 + $0x68] sm:$0xff]  }
 0x418   :  { %3254 = vmatprep.subr.bf16.mxu1 %v3761_v40 }
 0x41a   :  { %2641 = vmatpush1.bf16.msra.mxu0 %v3665_v8  ;;  %v3737_v8 = vld [vmem:[#allocation6 + $0x7a0] ss:$8 sps:$4 sm:$0xff]  }
 0x41b   :  { %2642 = vmatprep.subr.bf16.mxu0 %v3670_v48  ;;  %3255 = vmatpush3.bf16.msra.mxu1 %v3762_v20  ;;  %v3742_v48 = vld [vmem:[#allocation6 + $0x7b4] ss:$8 sps:$4 sm:$0xff]  }
 0x41c   :  { %3256 = vmatprep.subr.bf16.mxu1 %v3763_v11 }
 0x41e   :  { %2643 = vmatpush1.bf16.msra.mxu0 %v3668_v7  ;;  %v3766_v7 = vld [vmem:[%s4210_s12 + $0x28] sm:$0xff]  }
 0x41f   :  { %2644 = vmatprep.subr.bf16.mxu0 %v3673_v49  ;;  %3257 = vmatpush3.bf16.msra.mxu1 %v3764_v45  ;;  %v3740_v49 = vld [vmem:[#allocation6 + $0x7b0] ss:$8 sps:$4 sm:$0xff]  }
 0x420   :  { %3258 = vmatprep.subr.bf16.mxu1 %v3765_v47 }
 0x422   :  { %2645 = vmatpush1.bf16.msra.mxu0 %v3671_v50  ;;  %v3745_v50 = vld [vmem:[#allocation6 + $0x7c4] ss:$8 sps:$4 sm:$0xff]  }
 0x423   :  { %2646 = vmatprep.subr.bf16.mxu0 %v3676_v51  ;;  %3259 = vmatpush3.bf16.msra.mxu1 %v3766_v7  ;;  %v3743_v51 = vld [vmem:[#allocation6 + $0x7c0] ss:$8 sps:$4 sm:$0xff]  }
 0x426   :  { %2647 = vmatpush1.bf16.msra.mxu0 %v3674_v52  ;;  %v3748_v52 = vld [vmem:[#allocation6 + $0x7d4] ss:$8 sps:$4 sm:$0xff]  }
 0x427   :  { %2648 = vmatprep.subr.bf16.mxu0 %v3679_v1  ;;  %v3746_v1 = vld [vmem:[#allocation6 + $0x7d0] ss:$8 sps:$4 sm:$0xff]  }
 0x42a   :  { %2649 = vmatpush1.bf16.msra.mxu0 %v3677_v53  ;;  %v3751_v53 = vld [vmem:[#allocation6 + $0x7e4] ss:$8 sps:$4 sm:$0xff]  }
 0x42b   :  { %2650 = vmatprep.subr.bf16.mxu0 %v3682_v54  ;;  %v3749_v54 = vld [vmem:[#allocation6 + $0x7e0] ss:$8 sps:$4 sm:$0xff]  }
 0x42e   :  { %2651 = vmatpush1.bf16.msra.mxu0 %v3680_v55  ;;  %v3754_v55 = vld [vmem:[#allocation6 + $0x7f4] ss:$8 sps:$4 sm:$0xff]  }
 0x42f   :  { %2652 = vmatprep.subr.bf16.mxu0 %v3685_v56  ;;  %v3752_v56 = vld [vmem:[#allocation6 + $0x7f0] ss:$8 sps:$4 sm:$0xff]  }
 0x432   :  { %2653 = vmatpush1.bf16.msra.mxu0 %v3683_v57  ;;  %v807_v57 = vcombine.high %v4100_v9, %v4100_v9  ;;  %v3769_v9 = vld [vmem:[%s4210_s12 + $0x78] sm:$0xff]  }
 0x433   :  { %2654 = vmatprep.subr.bf16.mxu0 %v3688_v58 }
 0x434   :  { %v840_v58 = vpack.c.bf16 %v807_v57, %v807_v57 }
 0x436   :  { %2655 = vmatpush1.bf16.msra.mxu0 %v3686_v59 }
 0x437   :  { %2656 = vmatprep.subr.bf16.mxu0 %v3691_v60 }
 0x43a   :  { %2657 = vmatpush1.bf16.msra.mxu0 %v3689_v61 }
 0x43b   :  { %2658 = vmatprep.subr.bf16.mxu0 %v3694_v62 }
 0x43e   :  { %2659 = vmatpush1.bf16.msra.mxu0 %v3692_v63  ;;  %v3767_v63 = vld [vmem:[%s4210_s12 + $0x70] sm:$0xff]  }
 0x43f   :  { %2660 = vmatprep.subr.bf16.mxu0 %v3697_v0  ;;  %v3768_v0 = vld [vmem:[%s4210_s12 + $0x30] sm:$0xff]   ;;  %3260 = vmatprep.subr.bf16.mxu1 %v3767_v63 }
 0x440   :  { %3261 = vmatpush3.bf16.msra.mxu1 %v3768_v0 }
 0x441   :  { %3262 = vmatprep.subr.bf16.mxu1 %v3769_v9 }
 0x442   :  { %2661 = vmatpush1.bf16.msra.mxu0 %v3695_v3  ;;  %v3770_v3 = vld [vmem:[%s4210_s12 + $0x38] sm:$0xff]  }
 0x443   :  { %2662 = vmatprep.subr.bf16.mxu0 %v3700_v4  ;;  %v1102_v4 = vsub.s32 0, %v4091_v46 }
 0x444   :  { %3263 = vmatpush3.bf16.msra.mxu1 %v3770_v3 }
 0x446   :  { %2663 = vmatpush1.bf16.msra.mxu0 %v3698_v6  ;;  %v1098_v6 = vld [vmem:[%s4209_s11] sm:$0x3] }
 0x447   :  { %2664 = vmatprep.subr.bf16.mxu0 %v3703_v10  ;;  %v1106_v10 = vsub.s32 1, %v4091_v46  ;;  %v3228_v46 = vld [vmem:[%s4211_s13] ss:$0 sm:$0xff] }
 0x44a   :  { %2665 = vmatpush1.bf16.msra.mxu0 %v3701_v12  ;;  %v1103_v12 = vrot.slane %v1098_v6, %v1102_v4 }
 0x44b   :  { %2666 = vmatprep.subr.bf16.mxu0 %v3706_v13  ;;  %v1107_v13 = vrot.slane %v1098_v6, %v1106_v10 }
 0x44e   :  { %2667 = vmatpush1.bf16.msra.mxu0 %v3704_v14 }
 0x44f   :  { %2677 = vmatprep.subr.bf16.mxu0 %v3709_v15 }
 0x451   :  { %2669 = vmatmul.mubr.bf16.vlgmr.msra.gmra.mrb[0].mxu0 %v838_v18 }
 0x452   :  { %2678 = vmatpush1.bf16.msra.mxu0 %v3707_v17  ;;  %2709 = vmatprep.mubr.bf16.mxu0 %v841_v21 }
 0x453   :  { %2679 = vmatprep.subr.bf16.mxu0 %v3712_v19 }
 0x456   :  { %2680 = vmatpush1.bf16.msra.mxu0 %v3710_v22 }
 0x457   :  { %2681 = vmatprep.subr.bf16.mxu0 %v3715_v23 }
 0x45a   :  { %2682 = vmatpush1.bf16.msra.mxu0 %v3713_v24 }
 0x45b   :  { %2683 = vmatprep.subr.bf16.mxu0 %v3718_v25 }
 0x45e   :  { %2684 = vmatpush1.bf16.msra.mxu0 %v3716_v28 }
 0x45f   :  { %2685 = vmatprep.subr.bf16.mxu0 %v3721_v26 }
 0x462   :  { %2686 = vmatpush1.bf16.msra.mxu0 %v3719_v27 }
 0x463   :  { %2687 = vmatprep.subr.bf16.mxu0 %v3724_v29 }
 0x466   :  { %2688 = vmatpush1.bf16.msra.mxu0 %v3722_v30 }
 0x467   :  { %2689 = vmatprep.subr.bf16.mxu0 %v3727_v31 }
 0x46a   :  { %2690 = vmatpush1.bf16.msra.mxu0 %v3725_v2 }
 0x46b   :  { %2691 = vmatprep.subr.bf16.mxu0 %v3730_v35 }
 0x46e   :  { %2692 = vmatpush1.bf16.msra.mxu0 %v3728_v38 }
 0x46f   :  { %2693 = vmatprep.subr.bf16.mxu0 %v3733_v5 }
 0x472   :  { %2694 = vmatpush1.bf16.msra.mxu0 %v3731_v41 }
 0x473   :  { %2695 = vmatprep.subr.bf16.mxu0 %v3736_v42 }
 0x476   :  { %2696 = vmatpush1.bf16.msra.mxu0 %v3734_v43 }
 0x477   :  { %2697 = vmatprep.subr.bf16.mxu0 %v3739_v44 }
 0x47a   :  { %2698 = vmatpush1.bf16.msra.mxu0 %v3737_v8 }
 0x47b   :  { %2699 = vmatprep.subr.bf16.mxu0 %v3742_v48 }
 0x47e   :  { %2700 = vmatpush1.bf16.msra.mxu0 %v3740_v49 }
 0x47f   :  { %2701 = vmatprep.subr.bf16.mxu0 %v3745_v50 }
 0x482   :  { %2702 = vmatpush1.bf16.msra.mxu0 %v3743_v51 }
 0x483   :  { %2703 = vmatprep.subr.bf16.mxu0 %v3748_v52 }
 0x486   :  { %2704 = vmatpush1.bf16.msra.mxu0 %v3746_v1 }
 0x487   :  { %2705 = vmatprep.subr.bf16.mxu0 %v3751_v53 }
 0x48a   :  { %2706 = vmatpush1.bf16.msra.mxu0 %v3749_v54 }
 0x48b   :  { %2707 = vmatprep.subr.bf16.mxu0 %v3754_v55 }
 0x48e   :  { %2708 = vmatpush1.bf16.msra.mxu0 %v3752_v56 }
 0x491   :  { %2710 = vmatmul.mubr.bf16.vlgmr.msra.gmra.mrb[0].mxu0 %v840_v58 }
 0x4e1   :  { %v2506_v59 = vpop.f32.mrb[16].mxu1 }
 0x4e2   :  { %v2508_v60 = vpop.f32.mrb[17].mxu1  ;;  %v3270_v14 = vadd.f32 %v2506_v59, %v1103_v12 }
 0x4e3   :  { %v2510_v61 = vpop.f32.mrb[18].mxu1  ;;  %v3272_v15 = vadd.f32 %v2508_v60, %v1107_v13 }
 0x4e4   :  { %v2511_v62 = vpop.f32.mrb[19].mxu1 }
 0x564   :  { %v2711_v16 = vpop.f32.mrb[0].mxu0 }
 0x565   :  { %v3271_v17 = vadd.f32 %v3270_v14, %v2711_v16  ;;  %v2713_v18 = vpop.f32.mrb[1].mxu0 }
 0x566   :  { %v3273_v19 = vadd.f32 %v3272_v15, %v2713_v18  ;;  %v2715_v21 = vpop.f32.mrb[2].mxu0 }
 0x567   :  { %v2718_v22 = vmax.f32 %v3271_v17, 0.0  ;;  %v2716_v23 = vpop.f32.mrb[3].mxu0 }
 0x568   :  { %v2719_v24 = vmax.f32 %v3273_v19, 0.0 }
 0x569   :  { %v2720_v28 = vpack.c.bf16 %v2718_v22, %v2718_v22 }
 0x56a   :  { %v2721_v25 = vpack.c.bf16 %v2719_v24, %v2719_v24 }
 0x56c   :  { %2889 = vmatprep.mubr.bf16.mxu1 %v2721_v25 }
 0x56d   :  { %2890 = vmatmul.mubr.bf16.vlgmr.msra.gmra.mrb[20].mxu1 %v2720_v28 }
 0x640   :  { %v3264_v26 = vpop.f32.mrb[20].mxu1 }
 0x641   :  { %v3265_v27 = vpop.f32.mrb[21].mxu1 }
 0x642   :  { %v3266_v29 = vadd.f32 %v3265_v27, %v3264_v26  ;;  %v3267_v30 = vpop.f32.mrb[22].mxu1 }
 0x643   :  { %v3268_v31 = vpop.f32.mrb[23].mxu1 }
 0x644   :  { %v2892_v32 = vadd.f32 %v3266_v29, %v3228_v46 }
 0x646   :  { %v2897_v34 = vmax.f32 %v2892_v32, 0.0 }
 0x648   :  { %v2905_v2 = vmul.f32 %v3245_v33, %v2897_v34 }
 0x64a   :  { %v2907_v35 = vsel %vm2906_vm5, %v2905_v2, 0.0 }
 0x64b   :  { %2908 = vadd.xlane.f32.xlu0 %v2907_v35 }
 0x6d8   :  { %v2909_v37 = vpop.xlane.xlu0 %2908 }
 0x6d9   :  { %v2917_v38 = vadd.f32 %v3246_v36, %v2909_v37 }
 0x6db   :  { %v3247_v5 = vmul.f32 -1.442695, %v2917_v38 }
 0x6dd   :  { %3771 = vpow2.f32 %v3247_v5 }
 0x6e7   :  { %v3772_v39 = vpop.eup %3771 }
 0x6e8   :  { %v2921_v40 = vadd.f32 1.0, %v3772_v39 }
 0x6ea   :  { %3773 = vrcp.f32 %v2921_v40 }
 0x6f4   :  { %v3774_v41 = vpop.eup %3773 }
 0x6f5   :  { %2925 = vst.msk [vmem:[%s4214_s16] sm:$0x3] %vm2924_vm6, %v3774_v41 }
 0x6f6   :  { %2930 = vsyncpa [#allocation7], 1 }

</bundles_post_ra>
